<compile_context>
chip_gen: v7x
topology: tpu7x:2x2x1
jax: 0.10.0
libtpu: 0.0.40
codegen_flags: <defaults>
</compile_context>

<pallas_src>
import jax
import jax.numpy as jnp
from jax import lax
from jax.experimental import pallas as pl
from jax.experimental.pallas import tpu as pltpu

K = 7          # conv kernel size
PAD = K // 2   # = 3
KK = K * K     # 49


def _make_kernel(Bt, C, H, W):
    HW = H * W
    OFF0 = PAD * W + PAD          # flat offset of pixel (0, 0) in the padded map
    PADLEN = HW + 2 * OFF0        # zero border of 3*W+3 on each side
    CC = 8 if C >= 8 else C       # channels per streamed chunk (one f32 sublane tile)

    def kernel(w_ref, b_ref, x_ref, o_ref, pad_ref):
        # w_ref   : SMEM (2*49,) flat conv weights (first 49 avg taps, next 49 max taps)
        # b_ref   : SMEM (1,)    conv bias
        # x_ref   : VMEM (Bt, C, H*W) lane-dense input block
        # o_ref   : VMEM (Bt, C, H*W) lane-dense output block
        # pad_ref : VMEM (2, Bt, PADLEN) zero-padded flat avg/max maps

        # ---- streamed channel reduce (never materialize the whole block) ----
        s = jnp.zeros((Bt, HW), jnp.float32)
        m = jnp.full((Bt, HW), -jnp.inf, jnp.float32)
        for c0 in range(0, C, CC):
            cc = min(CC, C - c0)
            xc = x_ref[:, c0:c0 + cc, :].astype(jnp.float32)    # (Bt, cc, HW)
            s = s + jnp.sum(xc, axis=1)
            m = jnp.maximum(m, jnp.max(xc, axis=1))
        avg = s * (1.0 / C)

        # ---- write reduced maps into the flat zero-padded scratch ----
        # Border-only zeroing every step: the interior is fully overwritten
        # below, and a program_id==0 guard would be unsafe with a "parallel"
        # grid axis (per-core scratch).
        pad_ref[:, :, 0:OFF0] = jnp.zeros((2, Bt, OFF0), jnp.float32)
        pad_ref[:, :, OFF0 + HW:PADLEN] = jnp.zeros((2, Bt, OFF0), jnp.float32)
        pad_ref[0, :, OFF0:OFF0 + HW] = avg
        pad_ref[1, :, OFF0:OFF0 + HW] = m

        # ---- 7x7 conv directly in flat H*W space ----
        # Output pixel p = h*W + w, tap (kh, kw): source = pad[OFF0 + p +
        # (kh-3)*W + (kw-3)].  Rows outside [0, H) land in the zero border;
        # columns outside [0, W) are zeroed by the per-kw mask.  Together this
        # reproduces Conv2d's zero padding of [avg, max] exactly.  98 small
        # misaligned VMEM slices on two tiny maps — negligible next to the
        # HBM-bound main data movement.
        col = lax.broadcasted_iota(jnp.int32, (Bt, HW), 1) % W
        att = jnp.zeros((Bt, HW), jnp.float32) + b_ref[0]
        for kw in range(K):
            dw = kw - PAD
            part = jnp.zeros((Bt, HW), jnp.float32)
            for kh in range(K):
                t = kh * K + kw
                off = OFF0 + (kh - PAD) * W + dw
                part = (part
                        + w_ref[t] * pad_ref[0, :, off:off + HW]
                        + w_ref[KK + t] * pad_ref[1, :, off:off + HW])
            if dw == 0:
                att = att + part
            else:
                valid = (col + dw >= 0) & (col + dw < W)
                att = att + jnp.where(valid, part, 0.0)

        gate = jax.nn.sigmoid(att)[:, None, :]                  # (Bt, 1, HW) -> EUP

        # ---- streamed gated write-back (chunked, lane-dense stores) ----
        for c0 in range(0, C, CC):
            cc = min(CC, C - c0)
            xc = x_ref[:, c0:c0 + cc, :].astype(jnp.float32)
            o_ref[:, c0:c0 + cc, :] = (xc * gate).astype(o_ref.dtype)

    return kernel, PADLEN


def _round_up(v, m):
    return ((v + m - 1) // m) * m


def spatial_attention(x, w, b, *, vmem_limit_bytes=None):
    """x: (B, C, H, W); w: (2, 7, 7) conv weight (out-channel squeezed); b: (1,)."""
    B, C, H, W = x.shape
    HW = H * W
    itemsize = jnp.dtype(x.dtype).itemsize

    # Lane-dense view: collapse (H, W) -> H*W (free row-major reshape).
    x_flat = x.reshape(B, C, HW)

    # Per-batch VMEM block footprint (sublane/lane padded).
    sub = 8 if itemsize == 4 else 32 // itemsize
    per_batch = _round_up(C, sub) * _round_up(HW, 128) * itemsize

    # Batch multiple tiny blocks per grid step (amortize per-step overhead),
    # but keep >= 2 grid steps when B >= 2 so the "parallel" axis can still be
    # split across both TensorCores on v7x.
    Bt = 1
    if B > 1 and per_batch < (1 << 20):
        bt_max = max(1, min(B // 2, (2 << 20) // max(per_batch, 1)))
        for cand in range(bt_max, 0, -1):
            if B % cand == 0:
                Bt = cand
                break

    kernel, PADLEN = _make_kernel(Bt, C, H, W)

    # Real double-buffered footprint (+ headroom), clamped per generation.
    blk = Bt * per_batch
    pad_bytes = 2 * _round_up(Bt, 8) * _round_up(PADLEN, 128) * 4
    need = 2 * (blk + blk) + pad_bytes + (1 << 20)
    try:
        phys = int(getattr(pltpu.get_tpu_info(), "vmem_capacity_bytes", 0)) or (64 << 20)
    except Exception:
        phys = 64 << 20
    if vmem_limit_bytes is None:
        vmem_limit_bytes = min(max(int(1.5 * need), 16 << 20), int(phys * 0.75))
        vmem_limit_bytes = max(vmem_limit_bytes, min(need, phys - (4 << 20)))

    # w_flat[kh*7+kw] = avg tap, w_flat[49 + kh*7+kw] = max tap.
    w_flat = jnp.asarray(w, jnp.float32).reshape(-1)    # (98,)
    b_flat = jnp.asarray(b, jnp.float32).reshape(-1)    # (1,)

    cost = pl.CostEstimate(
        flops=int(B * (3 * C * HW + 4 * KK * HW)),
        transcendentals=int(B * HW),
        bytes_accessed=int(2 * B * C * HW * itemsize),
    )

    out_flat = pl.pallas_call(
        kernel,
        out_shape=jax.ShapeDtypeStruct((B, C, HW), x.dtype),
        grid_spec=pltpu.PrefetchScalarGridSpec(
            num_scalar_prefetch=0,
            grid=(B // Bt,),
            in_specs=[
                pl.BlockSpec(memory_space=pltpu.MemorySpace.SMEM),   # conv weights (98,)
                pl.BlockSpec(memory_space=pltpu.MemorySpace.SMEM),   # conv bias (1,)
                pl.BlockSpec((Bt, C, HW), lambda i: (i, 0, 0)),
            ],
            out_specs=pl.BlockSpec((Bt, C, HW), lambda i: (i, 0, 0)),
            scratch_shapes=[pltpu.VMEM((2, Bt, PADLEN), jnp.float32)],
        ),
        compiler_params=pltpu.CompilerParams(
            dimension_semantics=("parallel",),
            vmem_limit_bytes=int(vmem_limit_bytes),
        ),
        cost_estimate=cost,
    )(w_flat, b_flat, x_flat)

    return out_flat.reshape(B, C, H, W)


def spatial_attention_ref(x, w, b):
    """Pure-JAX reference matching the PyTorch module."""
    avg = jnp.mean(x, axis=1, keepdims=True)
    mx = jnp.max(x, axis=1, keepdims=True)
    cat = jnp.concatenate([avg, mx], axis=1)                       # (B, 2, H, W)
    att = jax.lax.conv_general_dilated(
        cat, w[None],                                              # (1, 2, 7, 7)
        window_strides=(1, 1), padding=((PAD, PAD), (PAD, PAD)),
        dimension_numbers=("NCHW", "OIHW", "NCHW")) + b[0]
    return x * jax.nn.sigmoid(att)


if __name__ == "__main__":
    B, C, H, W = 2, 4, 16, 16
    key = jax.random.PRNGKey(0)
    kx, kw, kb = jax.random.split(key, 3)

    x = jax.random.normal(kx, (B, C, H, W), dtype=jnp.float32)
    # Deterministic synthetic params (Conv2d(2,1,7) -> weight (1,2,7,7) squeezed, bias (1,))
    w = jax.random.normal(kw, (2, K, K), dtype=jnp.float32) * 0.1
    b = jax.random.normal(kb, (1,), dtype=jnp.float32) * 0.1

    out = spatial_attention(x, w, b)
    out = jax.block_until_ready(out)

    ref = spatial_attention_ref(x, w, b)
    assert out.shape == (B, C, H, W)
    assert jnp.allclose(out, ref, atol=1e-5, rtol=1e-5), float(jnp.max(jnp.abs(out - ref)))

    print("KERNEL_OK")
</pallas_src>

<mosaic_0001>
module attributes {stable_mosaic.version = 11 : i64} {
  func.func @kernel(%arg0: i32, %arg1: memref<98xf32, #tpu.memory_space<smem>>, %arg2: memref<1xf32, #tpu.memory_space<smem>>, %arg3: memref<1x4x256xf32, #tpu.memory_space<vmem>>, %arg4: memref<1x4x256xf32, #tpu.memory_space<vmem>>, %arg5: memref<2x1x358xf32, #tpu.memory_space<vmem>>) attributes {dimension_semantics = [#tpu.dimension_semantics<parallel>], iteration_bounds = array<i64: 2>, scalar_prefetch = 0 : i64, scratch_operands = 1 : i64, tpu.core_type = #tpu.core_type<tc>, window_params = [{transform_indices = @transform_0, window_bounds = array<i64: 98>}, {transform_indices = @transform_1, window_bounds = array<i64: 1>}, {transform_indices = @transform_2, window_bounds = array<i64: 1, 4, 256>}, {transform_indices = @transform_3, window_bounds = array<i64: 1, 4, 256>}]} {
    %cst = arith.constant 0.000000e+00 : f32
    %0 = vector.broadcast %cst : f32 to vector<1x256xf32>
    %cst_0 = arith.constant 0xFF800000 : f32
    %1 = vector.broadcast %cst_0 : f32 to vector<1x256xf32>
    %c0 = arith.constant 0 : index
    %c0_1 = arith.constant 0 : index
    %c0_2 = arith.constant 0 : index
    %2 = vector.load %arg3[%c0, %c0_1, %c0_2] : memref<1x4x256xf32, #tpu.memory_space<vmem>>, vector<1x4x256xf32>
    %cst_3 = arith.constant dense<0.000000e+00> : vector<1x256xf32>
    %3 = vector.multi_reduction <add>, %2, %cst_3 [1] : vector<1x4x256xf32> to vector<1x256xf32>
    %4 = arith.addf %0, %3 : vector<1x256xf32>
    %cst_4 = arith.constant dense<0xFF800000> : vector<1x256xf32>
    %5 = vector.multi_reduction <maximumf>, %2, %cst_4 [1] : vector<1x4x256xf32> to vector<1x256xf32>
    %6 = arith.maximumf %1, %5 : vector<1x256xf32>
    %cst_5 = arith.constant 2.500000e-01 : f32
    %7 = vector.broadcast %cst_5 : f32 to vector<1x256xf32>
    %8 = arith.mulf %4, %7 : vector<1x256xf32>
    %cst_6 = arith.constant 0.000000e+00 : f32
    %9 = vector.broadcast %cst_6 : f32 to vector<2x1x51xf32>
    %c0_7 = arith.constant 0 : index
    %c0_8 = arith.constant 0 : index
    %c0_9 = arith.constant 0 : index
    %10 = vector.load %arg5[%c0_7, %c0_8, %c0_9] : memref<2x1x358xf32, #tpu.memory_space<vmem>>, vector<2x1x51xf32>
    tpu.vector_store %arg5[%c0_7, %c0_8, %c0_9], %9 {strides = array<i32>} : memref<2x1x358xf32, #tpu.memory_space<vmem>>, vector<2x1x51xf32>,
    %cst_10 = arith.constant 0.000000e+00 : f32
    %11 = vector.broadcast %cst_10 : f32 to vector<2x1x51xf32>
    %c0_11 = arith.constant 0 : index
    %c0_12 = arith.constant 0 : index
    %c307 = arith.constant 307 : index
    %12 = vector.load %arg5[%c0_11, %c0_12, %c307] : memref<2x1x358xf32, #tpu.memory_space<vmem>>, vector<2x1x51xf32>
    tpu.vector_store %arg5[%c0_11, %c0_12, %c307], %11 {strides = array<i32>} : memref<2x1x358xf32, #tpu.memory_space<vmem>>, vector<2x1x51xf32>,
    %c0_13 = arith.constant 0 : index
    %c0_14 = arith.constant 0 : index
    %c51 = arith.constant 51 : index
    %13 = vector.load %arg5[%c0_13, %c0_14, %c51] : memref<2x1x358xf32, #tpu.memory_space<vmem>>, vector<1x1x256xf32>
    %14 = vector.shape_cast %13 : vector<1x1x256xf32> to vector<1x256xf32>
    %15 = vector.shape_cast %8 : vector<1x256xf32> to vector<1x1x256xf32>
    tpu.vector_store %arg5[%c0_13, %c0_14, %c51], %15 {strides = array<i32>} : memref<2x1x358xf32, #tpu.memory_space<vmem>>, vector<1x1x256xf32>,
    %c1 = arith.constant 1 : index
    %c0_15 = arith.constant 0 : index
    %c51_16 = arith.constant 51 : index
    %16 = vector.load %arg5[%c1, %c0_15, %c51_16] : memref<2x1x358xf32, #tpu.memory_space<vmem>>, vector<1x1x256xf32>
    %17 = vector.shape_cast %16 : vector<1x1x256xf32> to vector<1x256xf32>
    %18 = vector.shape_cast %6 : vector<1x256xf32> to vector<1x1x256xf32>
    tpu.vector_store %arg5[%c1, %c0_15, %c51_16], %18 {strides = array<i32>} : memref<2x1x358xf32, #tpu.memory_space<vmem>>, vector<1x1x256xf32>,
    %19 = tpu.iota {dimensions = array<i32: 1>} : vector<1x256xi32>
    %c16_i32 = arith.constant 16 : i32
    %c0_i32 = arith.constant 0 : i32
    %20 = arith.cmpi eq, %c16_i32, %c0_i32 : i32
    %c1_i32 = arith.constant 1 : i32
    %21 = arith.select %20, %c1_i32, %c16_i32 : i32
    %22 = vector.broadcast %21 : i32 to vector<1x256xi32>
    %23 = arith.remsi %19, %22 : vector<1x256xi32>
    %c0_i32_17 = arith.constant 0 : i32
    %24 = vector.broadcast %c0_i32_17 : i32 to vector<1x256xi32>
    %25 = arith.cmpi ne, %23, %24 : vector<1x256xi32>
    %c0_i32_18 = arith.constant 0 : i32
    %26 = vector.broadcast %c0_i32_18 : i32 to vector<1x256xi32>
    %27 = arith.cmpi slt, %23, %26 : vector<1x256xi32>
    %c0_i32_19 = arith.constant 0 : i32
    %28 = arith.cmpi slt, %21, %c0_i32_19 : i32
    %29 = vector.broadcast %28 : i1 to vector<1x256xi1>
    %30 = vector.broadcast %29 : vector<1x256xi1> to vector<1x256xi1>
    %31 = arith.xori %27, %30 : vector<1x256xi1>
    %32 = arith.andi %31, %25 : vector<1x256xi1>
    %33 = vector.broadcast %21 : i32 to vector<1x256xi32>
    %34 = arith.addi %23, %33 : vector<1x256xi32>
    %35 = arith.select %32, %34, %23 : vector<1x256xi1>, vector<1x256xi32>
    %cst_20 = arith.constant 0.000000e+00 : f32
    %36 = vector.broadcast %cst_20 : f32 to vector<1x256xf32>
    %c0_21 = arith.constant 0 : index
    %37 = memref.load %arg2[%c0_21] : memref<1xf32, #tpu.memory_space<smem>>
    %38 = vector.broadcast %37 : f32 to vector<1x256xf32>
    %39 = arith.addf %36, %38 : vector<1x256xf32>
    %cst_22 = arith.constant 0.000000e+00 : f32
    %40 = vector.broadcast %cst_22 : f32 to vector<1x256xf32>
    %c0_23 = arith.constant 0 : index
    %41 = memref.load %arg1[%c0_23] : memref<98xf32, #tpu.memory_space<smem>>
    %c0_24 = arith.constant 0 : index
    %c0_25 = arith.constant 0 : index
    %c0_26 = arith.constant 0 : index
    %42 = vector.load %arg5[%c0_24, %c0_25, %c0_26] : memref<2x1x358xf32, #tpu.memory_space<vmem>>, vector<1x1x256xf32>
    %43 = vector.shape_cast %42 : vector<1x1x256xf32> to vector<1x256xf32>
    %44 = vector.broadcast %41 : f32 to vector<1x256xf32>
    %45 = arith.mulf %44, %43 : vector<1x256xf32>
    %46 = arith.addf %40, %45 : vector<1x256xf32>
    %c49 = arith.constant 49 : index
    %47 = memref.load %arg1[%c49] : memref<98xf32, #tpu.memory_space<smem>>
    %c1_27 = arith.constant 1 : index
    %c0_28 = arith.constant 0 : index
    %c0_29 = arith.constant 0 : index
    %48 = vector.load %arg5[%c1_27, %c0_28, %c0_29] : memref<2x1x358xf32, #tpu.memory_space<vmem>>, vector<1x1x256xf32>
    %49 = vector.shape_cast %48 : vector<1x1x256xf32> to vector<1x256xf32>
    %50 = vector.broadcast %47 : f32 to vector<1x256xf32>
    %51 = arith.mulf %50, %49 : vector<1x256xf32>
    %52 = arith.addf %46, %51 : vector<1x256xf32>
    %c7 = arith.constant 7 : index
    %53 = memref.load %arg1[%c7] : memref<98xf32, #tpu.memory_space<smem>>
    %c0_30 = arith.constant 0 : index
    %c0_31 = arith.constant 0 : index
    %c16 = arith.constant 16 : index
    %54 = vector.load %arg5[%c0_30, %c0_31, %c16] : memref<2x1x358xf32, #tpu.memory_space<vmem>>, vector<1x1x256xf32>
    %55 = vector.shape_cast %54 : vector<1x1x256xf32> to vector<1x256xf32>
    %56 = vector.broadcast %53 : f32 to vector<1x256xf32>
    %57 = arith.mulf %56, %55 : vector<1x256xf32>
    %58 = arith.addf %52, %57 : vector<1x256xf32>
    %c56 = arith.constant 56 : index
    %59 = memref.load %arg1[%c56] : memref<98xf32, #tpu.memory_space<smem>>
    %c1_32 = arith.constant 1 : index
    %c0_33 = arith.constant 0 : index
    %c16_34 = arith.constant 16 : index
    %60 = vector.load %arg5[%c1_32, %c0_33, %c16_34] : memref<2x1x358xf32, #tpu.memory_space<vmem>>, vector<1x1x256xf32>
    %61 = vector.shape_cast %60 : vector<1x1x256xf32> to vector<1x256xf32>
    %62 = vector.broadcast %59 : f32 to vector<1x256xf32>
    %63 = arith.mulf %62, %61 : vector<1x256xf32>
    %64 = arith.addf %58, %63 : vector<1x256xf32>
    %c14 = arith.constant 14 : index
    %65 = memref.load %arg1[%c14] : memref<98xf32, #tpu.memory_space<smem>>
    %c0_35 = arith.constant 0 : index
    %c0_36 = arith.constant 0 : index
    %c32 = arith.constant 32 : index
    %66 = vector.load %arg5[%c0_35, %c0_36, %c32] : memref<2x1x358xf32, #tpu.memory_space<vmem>>, vector<1x1x256xf32>
    %67 = vector.shape_cast %66 : vector<1x1x256xf32> to vector<1x256xf32>
    %68 = vector.broadcast %65 : f32 to vector<1x256xf32>
    %69 = arith.mulf %68, %67 : vector<1x256xf32>
    %70 = arith.addf %64, %69 : vector<1x256xf32>
    %c63 = arith.constant 63 : index
    %71 = memref.load %arg1[%c63] : memref<98xf32, #tpu.memory_space<smem>>
    %c1_37 = arith.constant 1 : index
    %c0_38 = arith.constant 0 : index
    %c32_39 = arith.constant 32 : index
    %72 = vector.load %arg5[%c1_37, %c0_38, %c32_39] : memref<2x1x358xf32, #tpu.memory_space<vmem>>, vector<1x1x256xf32>
    %73 = vector.shape_cast %72 : vector<1x1x256xf32> to vector<1x256xf32>
    %74 = vector.broadcast %71 : f32 to vector<1x256xf32>
    %75 = arith.mulf %74, %73 : vector<1x256xf32>
    %76 = arith.addf %70, %75 : vector<1x256xf32>
    %c21 = arith.constant 21 : index
    %77 = memref.load %arg1[%c21] : memref<98xf32, #tpu.memory_space<smem>>
    %c0_40 = arith.constant 0 : index
    %c0_41 = arith.constant 0 : index
    %c48 = arith.constant 48 : index
    %78 = vector.load %arg5[%c0_40, %c0_41, %c48] : memref<2x1x358xf32, #tpu.memory_space<vmem>>, vector<1x1x256xf32>
    %79 = vector.shape_cast %78 : vector<1x1x256xf32> to vector<1x256xf32>
    %80 = vector.broadcast %77 : f32 to vector<1x256xf32>
    %81 = arith.mulf %80, %79 : vector<1x256xf32>
    %82 = arith.addf %76, %81 : vector<1x256xf32>
    %c70 = arith.constant 70 : index
    %83 = memref.load %arg1[%c70] : memref<98xf32, #tpu.memory_space<smem>>
    %c1_42 = arith.constant 1 : index
    %c0_43 = arith.constant 0 : index
    %c48_44 = arith.constant 48 : index
    %84 = vector.load %arg5[%c1_42, %c0_43, %c48_44] : memref<2x1x358xf32, #tpu.memory_space<vmem>>, vector<1x1x256xf32>
    %85 = vector.shape_cast %84 : vector<1x1x256xf32> to vector<1x256xf32>
    %86 = vector.broadcast %83 : f32 to vector<1x256xf32>
    %87 = arith.mulf %86, %85 : vector<1x256xf32>
    %88 = arith.addf %82, %87 : vector<1x256xf32>
    %c28 = arith.constant 28 : index
    %89 = memref.load %arg1[%c28] : memref<98xf32, #tpu.memory_space<smem>>
    %c0_45 = arith.constant 0 : index
    %c0_46 = arith.constant 0 : index
    %c64 = arith.constant 64 : index
    %90 = vector.load %arg5[%c0_45, %c0_46, %c64] : memref<2x1x358xf32, #tpu.memory_space<vmem>>, vector<1x1x256xf32>
    %91 = vector.shape_cast %90 : vector<1x1x256xf32> to vector<1x256xf32>
    %92 = vector.broadcast %89 : f32 to vector<1x256xf32>
    %93 = arith.mulf %92, %91 : vector<1x256xf32>
    %94 = arith.addf %88, %93 : vector<1x256xf32>
    %c77 = arith.constant 77 : index
    %95 = memref.load %arg1[%c77] : memref<98xf32, #tpu.memory_space<smem>>
    %c1_47 = arith.constant 1 : index
    %c0_48 = arith.constant 0 : index
    %c64_49 = arith.constant 64 : index
    %96 = vector.load %arg5[%c1_47, %c0_48, %c64_49] : memref<2x1x358xf32, #tpu.memory_space<vmem>>, vector<1x1x256xf32>
    %97 = vector.shape_cast %96 : vector<1x1x256xf32> to vector<1x256xf32>
    %98 = vector.broadcast %95 : f32 to vector<1x256xf32>
    %99 = arith.mulf %98, %97 : vector<1x256xf32>
    %100 = arith.addf %94, %99 : vector<1x256xf32>
    %c35 = arith.constant 35 : index
    %101 = memref.load %arg1[%c35] : memref<98xf32, #tpu.memory_space<smem>>
    %c0_50 = arith.constant 0 : index
    %c0_51 = arith.constant 0 : index
    %c80 = arith.constant 80 : index
    %102 = vector.load %arg5[%c0_50, %c0_51, %c80] : memref<2x1x358xf32, #tpu.memory_space<vmem>>, vector<1x1x256xf32>
    %103 = vector.shape_cast %102 : vector<1x1x256xf32> to vector<1x256xf32>
    %104 = vector.broadcast %101 : f32 to vector<1x256xf32>
    %105 = arith.mulf %104, %103 : vector<1x256xf32>
    %106 = arith.addf %100, %105 : vector<1x256xf32>
    %c84 = arith.constant 84 : index
    %107 = memref.load %arg1[%c84] : memref<98xf32, #tpu.memory_space<smem>>
    %c1_52 = arith.constant 1 : index
    %c0_53 = arith.constant 0 : index
    %c80_54 = arith.constant 80 : index
    %108 = vector.load %arg5[%c1_52, %c0_53, %c80_54] : memref<2x1x358xf32, #tpu.memory_space<vmem>>, vector<1x1x256xf32>
    %109 = vector.shape_cast %108 : vector<1x1x256xf32> to vector<1x256xf32>
    %110 = vector.broadcast %107 : f32 to vector<1x256xf32>
    %111 = arith.mulf %110, %109 : vector<1x256xf32>
    %112 = arith.addf %106, %111 : vector<1x256xf32>
    %c42 = arith.constant 42 : index
    %113 = memref.load %arg1[%c42] : memref<98xf32, #tpu.memory_space<smem>>
    %c0_55 = arith.constant 0 : index
    %c0_56 = arith.constant 0 : index
    %c96 = arith.constant 96 : index
    %114 = vector.load %arg5[%c0_55, %c0_56, %c96] : memref<2x1x358xf32, #tpu.memory_space<vmem>>, vector<1x1x256xf32>
    %115 = vector.shape_cast %114 : vector<1x1x256xf32> to vector<1x256xf32>
    %116 = vector.broadcast %113 : f32 to vector<1x256xf32>
    %117 = arith.mulf %116, %115 : vector<1x256xf32>
    %118 = arith.addf %112, %117 : vector<1x256xf32>
    %c91 = arith.constant 91 : index
    %119 = memref.load %arg1[%c91] : memref<98xf32, #tpu.memory_space<smem>>
    %c1_57 = arith.constant 1 : index
    %c0_58 = arith.constant 0 : index
    %c96_59 = arith.constant 96 : index
    %120 = vector.load %arg5[%c1_57, %c0_58, %c96_59] : memref<2x1x358xf32, #tpu.memory_space<vmem>>, vector<1x1x256xf32>
    %121 = vector.shape_cast %120 : vector<1x1x256xf32> to vector<1x256xf32>
    %122 = vector.broadcast %119 : f32 to vector<1x256xf32>
    %123 = arith.mulf %122, %121 : vector<1x256xf32>
    %124 = arith.addf %118, %123 : vector<1x256xf32>
    %c-3_i32 = arith.constant -3 : i32
    %125 = vector.broadcast %c-3_i32 : i32 to vector<1x256xi32>
    %126 = arith.addi %35, %125 : vector<1x256xi32>
    %c0_i32_60 = arith.constant 0 : i32
    %127 = vector.broadcast %c0_i32_60 : i32 to vector<1x256xi32>
    %128 = arith.cmpi sge, %126, %127 : vector<1x256xi32>
    %c-3_i32_61 = arith.constant -3 : i32
    %129 = vector.broadcast %c-3_i32_61 : i32 to vector<1x256xi32>
    %130 = arith.addi %35, %129 : vector<1x256xi32>
    %c16_i32_62 = arith.constant 16 : i32
    %131 = vector.broadcast %c16_i32_62 : i32 to vector<1x256xi32>
    %132 = arith.cmpi slt, %130, %131 : vector<1x256xi32>
    %133 = arith.andi %128, %132 : vector<1x256xi1>
    %cst_63 = arith.constant 0.000000e+00 : f32
    %134 = vector.broadcast %cst_63 : f32 to vector<1x256xf32>
    %135 = arith.select %133, %124, %134 : vector<1x256xi1>, vector<1x256xf32>
    %136 = arith.addf %39, %135 : vector<1x256xf32>
    %cst_64 = arith.constant 0.000000e+00 : f32
    %137 = vector.broadcast %cst_64 : f32 to vector<1x256xf32>
    %c1_65 = arith.constant 1 : index
    %138 = memref.load %arg1[%c1_65] : memref<98xf32, #tpu.memory_space<smem>>
    %c0_66 = arith.constant 0 : index
    %c0_67 = arith.constant 0 : index
    %c1_68 = arith.constant 1 : index
    %139 = vector.load %arg5[%c0_66, %c0_67, %c1_68] : memref<2x1x358xf32, #tpu.memory_space<vmem>>, vector<1x1x256xf32>
    %140 = vector.shape_cast %139 : vector<1x1x256xf32> to vector<1x256xf32>
    %141 = vector.broadcast %138 : f32 to vector<1x256xf32>
    %142 = arith.mulf %141, %140 : vector<1x256xf32>
    %143 = arith.addf %137, %142 : vector<1x256xf32>
    %c50 = arith.constant 50 : index
    %144 = memref.load %arg1[%c50] : memref<98xf32, #tpu.memory_space<smem>>
    %c1_69 = arith.constant 1 : index
    %c0_70 = arith.constant 0 : index
    %c1_71 = arith.constant 1 : index
    %145 = vector.load %arg5[%c1_69, %c0_70, %c1_71] : memref<2x1x358xf32, #tpu.memory_space<vmem>>, vector<1x1x256xf32>
    %146 = vector.shape_cast %145 : vector<1x1x256xf32> to vector<1x256xf32>
    %147 = vector.broadcast %144 : f32 to vector<1x256xf32>
    %148 = arith.mulf %147, %146 : vector<1x256xf32>
    %149 = arith.addf %143, %148 : vector<1x256xf32>
    %c8 = arith.constant 8 : index
    %150 = memref.load %arg1[%c8] : memref<98xf32, #tpu.memory_space<smem>>
    %c0_72 = arith.constant 0 : index
    %c0_73 = arith.constant 0 : index
    %c17 = arith.constant 17 : index
    %151 = vector.load %arg5[%c0_72, %c0_73, %c17] : memref<2x1x358xf32, #tpu.memory_space<vmem>>, vector<1x1x256xf32>
    %152 = vector.shape_cast %151 : vector<1x1x256xf32> to vector<1x256xf32>
    %153 = vector.broadcast %150 : f32 to vector<1x256xf32>
    %154 = arith.mulf %153, %152 : vector<1x256xf32>
    %155 = arith.addf %149, %154 : vector<1x256xf32>
    %c57 = arith.constant 57 : index
    %156 = memref.load %arg1[%c57] : memref<98xf32, #tpu.memory_space<smem>>
    %c1_74 = arith.constant 1 : index
    %c0_75 = arith.constant 0 : index
    %c17_76 = arith.constant 17 : index
    %157 = vector.load %arg5[%c1_74, %c0_75, %c17_76] : memref<2x1x358xf32, #tpu.memory_space<vmem>>, vector<1x1x256xf32>
    %158 = vector.shape_cast %157 : vector<1x1x256xf32> to vector<1x256xf32>
    %159 = vector.broadcast %156 : f32 to vector<1x256xf32>
    %160 = arith.mulf %159, %158 : vector<1x256xf32>
    %161 = arith.addf %155, %160 : vector<1x256xf32>
    %c15 = arith.constant 15 : index
    %162 = memref.load %arg1[%c15] : memref<98xf32, #tpu.memory_space<smem>>
    %c0_77 = arith.constant 0 : index
    %c0_78 = arith.constant 0 : index
    %c33 = arith.constant 33 : index
    %163 = vector.load %arg5[%c0_77, %c0_78, %c33] : memref<2x1x358xf32, #tpu.memory_space<vmem>>, vector<1x1x256xf32>
    %164 = vector.shape_cast %163 : vector<1x1x256xf32> to vector<1x256xf32>
    %165 = vector.broadcast %162 : f32 to vector<1x256xf32>
    %166 = arith.mulf %165, %164 : vector<1x256xf32>
    %167 = arith.addf %161, %166 : vector<1x256xf32>
    %c64_79 = arith.constant 64 : index
    %168 = memref.load %arg1[%c64_79] : memref<98xf32, #tpu.memory_space<smem>>
    %c1_80 = arith.constant 1 : index
    %c0_81 = arith.constant 0 : index
    %c33_82 = arith.constant 33 : index
    %169 = vector.load %arg5[%c1_80, %c0_81, %c33_82] : memref<2x1x358xf32, #tpu.memory_space<vmem>>, vector<1x1x256xf32>
    %170 = vector.shape_cast %169 : vector<1x1x256xf32> to vector<1x256xf32>
    %171 = vector.broadcast %168 : f32 to vector<1x256xf32>
    %172 = arith.mulf %171, %170 : vector<1x256xf32>
    %173 = arith.addf %167, %172 : vector<1x256xf32>
    %c22 = arith.constant 22 : index
    %174 = memref.load %arg1[%c22] : memref<98xf32, #tpu.memory_space<smem>>
    %c0_83 = arith.constant 0 : index
    %c0_84 = arith.constant 0 : index
    %c49_85 = arith.constant 49 : index
    %175 = vector.load %arg5[%c0_83, %c0_84, %c49_85] : memref<2x1x358xf32, #tpu.memory_space<vmem>>, vector<1x1x256xf32>
    %176 = vector.shape_cast %175 : vector<1x1x256xf32> to vector<1x256xf32>
    %177 = vector.broadcast %174 : f32 to vector<1x256xf32>
    %178 = arith.mulf %177, %176 : vector<1x256xf32>
    %179 = arith.addf %173, %178 : vector<1x256xf32>
    %c71 = arith.constant 71 : index
    %180 = memref.load %arg1[%c71] : memref<98xf32, #tpu.memory_space<smem>>
    %c1_86 = arith.constant 1 : index
    %c0_87 = arith.constant 0 : index
    %c49_88 = arith.constant 49 : index
    %181 = vector.load %arg5[%c1_86, %c0_87, %c49_88] : memref<2x1x358xf32, #tpu.memory_space<vmem>>, vector<1x1x256xf32>
    %182 = vector.shape_cast %181 : vector<1x1x256xf32> to vector<1x256xf32>
    %183 = vector.broadcast %180 : f32 to vector<1x256xf32>
    %184 = arith.mulf %183, %182 : vector<1x256xf32>
    %185 = arith.addf %179, %184 : vector<1x256xf32>
    %c29 = arith.constant 29 : index
    %186 = memref.load %arg1[%c29] : memref<98xf32, #tpu.memory_space<smem>>
    %c0_89 = arith.constant 0 : index
    %c0_90 = arith.constant 0 : index
    %c65 = arith.constant 65 : index
    %187 = vector.load %arg5[%c0_89, %c0_90, %c65] : memref<2x1x358xf32, #tpu.memory_space<vmem>>, vector<1x1x256xf32>
    %188 = vector.shape_cast %187 : vector<1x1x256xf32> to vector<1x256xf32>
    %189 = vector.broadcast %186 : f32 to vector<1x256xf32>
    %190 = arith.mulf %189, %188 : vector<1x256xf32>
    %191 = arith.addf %185, %190 : vector<1x256xf32>
    %c78 = arith.constant 78 : index
    %192 = memref.load %arg1[%c78] : memref<98xf32, #tpu.memory_space<smem>>
    %c1_91 = arith.constant 1 : index
    %c0_92 = arith.constant 0 : index
    %c65_93 = arith.constant 65 : index
    %193 = vector.load %arg5[%c1_91, %c0_92, %c65_93] : memref<2x1x358xf32, #tpu.memory_space<vmem>>, vector<1x1x256xf32>
    %194 = vector.shape_cast %193 : vector<1x1x256xf32> to vector<1x256xf32>
    %195 = vector.broadcast %192 : f32 to vector<1x256xf32>
    %196 = arith.mulf %195, %194 : vector<1x256xf32>
    %197 = arith.addf %191, %196 : vector<1x256xf32>
    %c36 = arith.constant 36 : index
    %198 = memref.load %arg1[%c36] : memref<98xf32, #tpu.memory_space<smem>>
    %c0_94 = arith.constant 0 : index
    %c0_95 = arith.constant 0 : index
    %c81 = arith.constant 81 : index
    %199 = vector.load %arg5[%c0_94, %c0_95, %c81] : memref<2x1x358xf32, #tpu.memory_space<vmem>>, vector<1x1x256xf32>
    %200 = vector.shape_cast %199 : vector<1x1x256xf32> to vector<1x256xf32>
    %201 = vector.broadcast %198 : f32 to vector<1x256xf32>
    %202 = arith.mulf %201, %200 : vector<1x256xf32>
    %203 = arith.addf %197, %202 : vector<1x256xf32>
    %c85 = arith.constant 85 : index
    %204 = memref.load %arg1[%c85] : memref<98xf32, #tpu.memory_space<smem>>
    %c1_96 = arith.constant 1 : index
    %c0_97 = arith.constant 0 : index
    %c81_98 = arith.constant 81 : index
    %205 = vector.load %arg5[%c1_96, %c0_97, %c81_98] : memref<2x1x358xf32, #tpu.memory_space<vmem>>, vector<1x1x256xf32>
    %206 = vector.shape_cast %205 : vector<1x1x256xf32> to vector<1x256xf32>
    %207 = vector.broadcast %204 : f32 to vector<1x256xf32>
    %208 = arith.mulf %207, %206 : vector<1x256xf32>
    %209 = arith.addf %203, %208 : vector<1x256xf32>
    %c43 = arith.constant 43 : index
    %210 = memref.load %arg1[%c43] : memref<98xf32, #tpu.memory_space<smem>>
    %c0_99 = arith.constant 0 : index
    %c0_100 = arith.constant 0 : index
    %c97 = arith.constant 97 : index
    %211 = vector.load %arg5[%c0_99, %c0_100, %c97] : memref<2x1x358xf32, #tpu.memory_space<vmem>>, vector<1x1x256xf32>
    %212 = vector.shape_cast %211 : vector<1x1x256xf32> to vector<1x256xf32>
    %213 = vector.broadcast %210 : f32 to vector<1x256xf32>
    %214 = arith.mulf %213, %212 : vector<1x256xf32>
    %215 = arith.addf %209, %214 : vector<1x256xf32>
    %c92 = arith.constant 92 : index
    %216 = memref.load %arg1[%c92] : memref<98xf32, #tpu.memory_space<smem>>
    %c1_101 = arith.constant 1 : index
    %c0_102 = arith.constant 0 : index
    %c97_103 = arith.constant 97 : index
    %217 = vector.load %arg5[%c1_101, %c0_102, %c97_103] : memref<2x1x358xf32, #tpu.memory_space<vmem>>, vector<1x1x256xf32>
    %218 = vector.shape_cast %217 : vector<1x1x256xf32> to vector<1x256xf32>
    %219 = vector.broadcast %216 : f32 to vector<1x256xf32>
    %220 = arith.mulf %219, %218 : vector<1x256xf32>
    %221 = arith.addf %215, %220 : vector<1x256xf32>
    %c-2_i32 = arith.constant -2 : i32
    %222 = vector.broadcast %c-2_i32 : i32 to vector<1x256xi32>
    %223 = arith.addi %35, %222 : vector<1x256xi32>
    %c0_i32_104 = arith.constant 0 : i32
    %224 = vector.broadcast %c0_i32_104 : i32 to vector<1x256xi32>
    %225 = arith.cmpi sge, %223, %224 : vector<1x256xi32>
    %c-2_i32_105 = arith.constant -2 : i32
    %226 = vector.broadcast %c-2_i32_105 : i32 to vector<1x256xi32>
    %227 = arith.addi %35, %226 : vector<1x256xi32>
    %c16_i32_106 = arith.constant 16 : i32
    %228 = vector.broadcast %c16_i32_106 : i32 to vector<1x256xi32>
    %229 = arith.cmpi slt, %227, %228 : vector<1x256xi32>
    %230 = arith.andi %225, %229 : vector<1x256xi1>
    %cst_107 = arith.constant 0.000000e+00 : f32
    %231 = vector.broadcast %cst_107 : f32 to vector<1x256xf32>
    %232 = arith.select %230, %221, %231 : vector<1x256xi1>, vector<1x256xf32>
    %233 = arith.addf %136, %232 : vector<1x256xf32>
    %cst_108 = arith.constant 0.000000e+00 : f32
    %234 = vector.broadcast %cst_108 : f32 to vector<1x256xf32>
    %c2 = arith.constant 2 : index
    %235 = memref.load %arg1[%c2] : memref<98xf32, #tpu.memory_space<smem>>
    %c0_109 = arith.constant 0 : index
    %c0_110 = arith.constant 0 : index
    %c2_111 = arith.constant 2 : index
    %236 = vector.load %arg5[%c0_109, %c0_110, %c2_111] : memref<2x1x358xf32, #tpu.memory_space<vmem>>, vector<1x1x256xf32>
    %237 = vector.shape_cast %236 : vector<1x1x256xf32> to vector<1x256xf32>
    %238 = vector.broadcast %235 : f32 to vector<1x256xf32>
    %239 = arith.mulf %238, %237 : vector<1x256xf32>
    %240 = arith.addf %234, %239 : vector<1x256xf32>
    %c51_112 = arith.constant 51 : index
    %241 = memref.load %arg1[%c51_112] : memref<98xf32, #tpu.memory_space<smem>>
    %c1_113 = arith.constant 1 : index
    %c0_114 = arith.constant 0 : index
    %c2_115 = arith.constant 2 : index
    %242 = vector.load %arg5[%c1_113, %c0_114, %c2_115] : memref<2x1x358xf32, #tpu.memory_space<vmem>>, vector<1x1x256xf32>
    %243 = vector.shape_cast %242 : vector<1x1x256xf32> to vector<1x256xf32>
    %244 = vector.broadcast %241 : f32 to vector<1x256xf32>
    %245 = arith.mulf %244, %243 : vector<1x256xf32>
    %246 = arith.addf %240, %245 : vector<1x256xf32>
    %c9 = arith.constant 9 : index
    %247 = memref.load %arg1[%c9] : memref<98xf32, #tpu.memory_space<smem>>
    %c0_116 = arith.constant 0 : index
    %c0_117 = arith.constant 0 : index
    %c18 = arith.constant 18 : index
    %248 = vector.load %arg5[%c0_116, %c0_117, %c18] : memref<2x1x358xf32, #tpu.memory_space<vmem>>, vector<1x1x256xf32>
    %249 = vector.shape_cast %248 : vector<1x1x256xf32> to vector<1x256xf32>
    %250 = vector.broadcast %247 : f32 to vector<1x256xf32>
    %251 = arith.mulf %250, %249 : vector<1x256xf32>
    %252 = arith.addf %246, %251 : vector<1x256xf32>
    %c58 = arith.constant 58 : index
    %253 = memref.load %arg1[%c58] : memref<98xf32, #tpu.memory_space<smem>>
    %c1_118 = arith.constant 1 : index
    %c0_119 = arith.constant 0 : index
    %c18_120 = arith.constant 18 : index
    %254 = vector.load %arg5[%c1_118, %c0_119, %c18_120] : memref<2x1x358xf32, #tpu.memory_space<vmem>>, vector<1x1x256xf32>
    %255 = vector.shape_cast %254 : vector<1x1x256xf32> to vector<1x256xf32>
    %256 = vector.broadcast %253 : f32 to vector<1x256xf32>
    %257 = arith.mulf %256, %255 : vector<1x256xf32>
    %258 = arith.addf %252, %257 : vector<1x256xf32>
    %c16_121 = arith.constant 16 : index
    %259 = memref.load %arg1[%c16_121] : memref<98xf32, #tpu.memory_space<smem>>
    %c0_122 = arith.constant 0 : index
    %c0_123 = arith.constant 0 : index
    %c34 = arith.constant 34 : index
    %260 = vector.load %arg5[%c0_122, %c0_123, %c34] : memref<2x1x358xf32, #tpu.memory_space<vmem>>, vector<1x1x256xf32>
    %261 = vector.shape_cast %260 : vector<1x1x256xf32> to vector<1x256xf32>
    %262 = vector.broadcast %259 : f32 to vector<1x256xf32>
    %263 = arith.mulf %262, %261 : vector<1x256xf32>
    %264 = arith.addf %258, %263 : vector<1x256xf32>
    %c65_124 = arith.constant 65 : index
    %265 = memref.load %arg1[%c65_124] : memref<98xf32, #tpu.memory_space<smem>>
    %c1_125 = arith.constant 1 : index
    %c0_126 = arith.constant 0 : index
    %c34_127 = arith.constant 34 : index
    %266 = vector.load %arg5[%c1_125, %c0_126, %c34_127] : memref<2x1x358xf32, #tpu.memory_space<vmem>>, vector<1x1x256xf32>
    %267 = vector.shape_cast %266 : vector<1x1x256xf32> to vector<1x256xf32>
    %268 = vector.broadcast %265 : f32 to vector<1x256xf32>
    %269 = arith.mulf %268, %267 : vector<1x256xf32>
    %270 = arith.addf %264, %269 : vector<1x256xf32>
    %c23 = arith.constant 23 : index
    %271 = memref.load %arg1[%c23] : memref<98xf32, #tpu.memory_space<smem>>
    %c0_128 = arith.constant 0 : index
    %c0_129 = arith.constant 0 : index
    %c50_130 = arith.constant 50 : index
    %272 = vector.load %arg5[%c0_128, %c0_129, %c50_130] : memref<2x1x358xf32, #tpu.memory_space<vmem>>, vector<1x1x256xf32>
    %273 = vector.shape_cast %272 : vector<1x1x256xf32> to vector<1x256xf32>
    %274 = vector.broadcast %271 : f32 to vector<1x256xf32>
    %275 = arith.mulf %274, %273 : vector<1x256xf32>
    %276 = arith.addf %270, %275 : vector<1x256xf32>
    %c72 = arith.constant 72 : index
    %277 = memref.load %arg1[%c72] : memref<98xf32, #tpu.memory_space<smem>>
    %c1_131 = arith.constant 1 : index
    %c0_132 = arith.constant 0 : index
    %c50_133 = arith.constant 50 : index
    %278 = vector.load %arg5[%c1_131, %c0_132, %c50_133] : memref<2x1x358xf32, #tpu.memory_space<vmem>>, vector<1x1x256xf32>
    %279 = vector.shape_cast %278 : vector<1x1x256xf32> to vector<1x256xf32>
    %280 = vector.broadcast %277 : f32 to vector<1x256xf32>
    %281 = arith.mulf %280, %279 : vector<1x256xf32>
    %282 = arith.addf %276, %281 : vector<1x256xf32>
    %c30 = arith.constant 30 : index
    %283 = memref.load %arg1[%c30] : memref<98xf32, #tpu.memory_space<smem>>
    %c0_134 = arith.constant 0 : index
    %c0_135 = arith.constant 0 : index
    %c66 = arith.constant 66 : index
    %284 = vector.load %arg5[%c0_134, %c0_135, %c66] : memref<2x1x358xf32, #tpu.memory_space<vmem>>, vector<1x1x256xf32>
    %285 = vector.shape_cast %284 : vector<1x1x256xf32> to vector<1x256xf32>
    %286 = vector.broadcast %283 : f32 to vector<1x256xf32>
    %287 = arith.mulf %286, %285 : vector<1x256xf32>
    %288 = arith.addf %282, %287 : vector<1x256xf32>
    %c79 = arith.constant 79 : index
    %289 = memref.load %arg1[%c79] : memref<98xf32, #tpu.memory_space<smem>>
    %c1_136 = arith.constant 1 : index
    %c0_137 = arith.constant 0 : index
    %c66_138 = arith.constant 66 : index
    %290 = vector.load %arg5[%c1_136, %c0_137, %c66_138] : memref<2x1x358xf32, #tpu.memory_space<vmem>>, vector<1x1x256xf32>
    %291 = vector.shape_cast %290 : vector<1x1x256xf32> to vector<1x256xf32>
    %292 = vector.broadcast %289 : f32 to vector<1x256xf32>
    %293 = arith.mulf %292, %291 : vector<1x256xf32>
    %294 = arith.addf %288, %293 : vector<1x256xf32>
    %c37 = arith.constant 37 : index
    %295 = memref.load %arg1[%c37] : memref<98xf32, #tpu.memory_space<smem>>
    %c0_139 = arith.constant 0 : index
    %c0_140 = arith.constant 0 : index
    %c82 = arith.constant 82 : index
    %296 = vector.load %arg5[%c0_139, %c0_140, %c82] : memref<2x1x358xf32, #tpu.memory_space<vmem>>, vector<1x1x256xf32>
    %297 = vector.shape_cast %296 : vector<1x1x256xf32> to vector<1x256xf32>
    %298 = vector.broadcast %295 : f32 to vector<1x256xf32>
    %299 = arith.mulf %298, %297 : vector<1x256xf32>
    %300 = arith.addf %294, %299 : vector<1x256xf32>
    %c86 = arith.constant 86 : index
    %301 = memref.load %arg1[%c86] : memref<98xf32, #tpu.memory_space<smem>>
    %c1_141 = arith.constant 1 : index
    %c0_142 = arith.constant 0 : index
    %c82_143 = arith.constant 82 : index
    %302 = vector.load %arg5[%c1_141, %c0_142, %c82_143] : memref<2x1x358xf32, #tpu.memory_space<vmem>>, vector<1x1x256xf32>
    %303 = vector.shape_cast %302 : vector<1x1x256xf32> to vector<1x256xf32>
    %304 = vector.broadcast %301 : f32 to vector<1x256xf32>
    %305 = arith.mulf %304, %303 : vector<1x256xf32>
    %306 = arith.addf %300, %305 : vector<1x256xf32>
    %c44 = arith.constant 44 : index
    %307 = memref.load %arg1[%c44] : memref<98xf32, #tpu.memory_space<smem>>
    %c0_144 = arith.constant 0 : index
    %c0_145 = arith.constant 0 : index
    %c98 = arith.constant 98 : index
    %308 = vector.load %arg5[%c0_144, %c0_145, %c98] : memref<2x1x358xf32, #tpu.memory_space<vmem>>, vector<1x1x256xf32>
    %309 = vector.shape_cast %308 : vector<1x1x256xf32> to vector<1x256xf32>
    %310 = vector.broadcast %307 : f32 to vector<1x256xf32>
    %311 = arith.mulf %310, %309 : vector<1x256xf32>
    %312 = arith.addf %306, %311 : vector<1x256xf32>
    %c93 = arith.constant 93 : index
    %313 = memref.load %arg1[%c93] : memref<98xf32, #tpu.memory_space<smem>>
    %c1_146 = arith.constant 1 : index
    %c0_147 = arith.constant 0 : index
    %c98_148 = arith.constant 98 : index
    %314 = vector.load %arg5[%c1_146, %c0_147, %c98_148] : memref<2x1x358xf32, #tpu.memory_space<vmem>>, vector<1x1x256xf32>
    %315 = vector.shape_cast %314 : vector<1x1x256xf32> to vector<1x256xf32>
    %316 = vector.broadcast %313 : f32 to vector<1x256xf32>
    %317 = arith.mulf %316, %315 : vector<1x256xf32>
    %318 = arith.addf %312, %317 : vector<1x256xf32>
    %c-1_i32 = arith.constant -1 : i32
    %319 = vector.broadcast %c-1_i32 : i32 to vector<1x256xi32>
    %320 = arith.addi %35, %319 : vector<1x256xi32>
    %c0_i32_149 = arith.constant 0 : i32
    %321 = vector.broadcast %c0_i32_149 : i32 to vector<1x256xi32>
    %322 = arith.cmpi sge, %320, %321 : vector<1x256xi32>
    %c-1_i32_150 = arith.constant -1 : i32
    %323 = vector.broadcast %c-1_i32_150 : i32 to vector<1x256xi32>
    %324 = arith.addi %35, %323 : vector<1x256xi32>
    %c16_i32_151 = arith.constant 16 : i32
    %325 = vector.broadcast %c16_i32_151 : i32 to vector<1x256xi32>
    %326 = arith.cmpi slt, %324, %325 : vector<1x256xi32>
    %327 = arith.andi %322, %326 : vector<1x256xi1>
    %cst_152 = arith.constant 0.000000e+00 : f32
    %328 = vector.broadcast %cst_152 : f32 to vector<1x256xf32>
    %329 = arith.select %327, %318, %328 : vector<1x256xi1>, vector<1x256xf32>
    %330 = arith.addf %233, %329 : vector<1x256xf32>
    %cst_153 = arith.constant 0.000000e+00 : f32
    %331 = vector.broadcast %cst_153 : f32 to vector<1x256xf32>
    %c3 = arith.constant 3 : index
    %332 = memref.load %arg1[%c3] : memref<98xf32, #tpu.memory_space<smem>>
    %c0_154 = arith.constant 0 : index
    %c0_155 = arith.constant 0 : index
    %c3_156 = arith.constant 3 : index
    %333 = vector.load %arg5[%c0_154, %c0_155, %c3_156] : memref<2x1x358xf32, #tpu.memory_space<vmem>>, vector<1x1x256xf32>
    %334 = vector.shape_cast %333 : vector<1x1x256xf32> to vector<1x256xf32>
    %335 = vector.broadcast %332 : f32 to vector<1x256xf32>
    %336 = arith.mulf %335, %334 : vector<1x256xf32>
    %337 = arith.addf %331, %336 : vector<1x256xf32>
    %c52 = arith.constant 52 : index
    %338 = memref.load %arg1[%c52] : memref<98xf32, #tpu.memory_space<smem>>
    %c1_157 = arith.constant 1 : index
    %c0_158 = arith.constant 0 : index
    %c3_159 = arith.constant 3 : index
    %339 = vector.load %arg5[%c1_157, %c0_158, %c3_159] : memref<2x1x358xf32, #tpu.memory_space<vmem>>, vector<1x1x256xf32>
    %340 = vector.shape_cast %339 : vector<1x1x256xf32> to vector<1x256xf32>
    %341 = vector.broadcast %338 : f32 to vector<1x256xf32>
    %342 = arith.mulf %341, %340 : vector<1x256xf32>
    %343 = arith.addf %337, %342 : vector<1x256xf32>
    %c10 = arith.constant 10 : index
    %344 = memref.load %arg1[%c10] : memref<98xf32, #tpu.memory_space<smem>>
    %c0_160 = arith.constant 0 : index
    %c0_161 = arith.constant 0 : index
    %c19 = arith.constant 19 : index
    %345 = vector.load %arg5[%c0_160, %c0_161, %c19] : memref<2x1x358xf32, #tpu.memory_space<vmem>>, vector<1x1x256xf32>
    %346 = vector.shape_cast %345 : vector<1x1x256xf32> to vector<1x256xf32>
    %347 = vector.broadcast %344 : f32 to vector<1x256xf32>
    %348 = arith.mulf %347, %346 : vector<1x256xf32>
    %349 = arith.addf %343, %348 : vector<1x256xf32>
    %c59 = arith.constant 59 : index
    %350 = memref.load %arg1[%c59] : memref<98xf32, #tpu.memory_space<smem>>
    %c1_162 = arith.constant 1 : index
    %c0_163 = arith.constant 0 : index
    %c19_164 = arith.constant 19 : index
    %351 = vector.load %arg5[%c1_162, %c0_163, %c19_164] : memref<2x1x358xf32, #tpu.memory_space<vmem>>, vector<1x1x256xf32>
    %352 = vector.shape_cast %351 : vector<1x1x256xf32> to vector<1x256xf32>
    %353 = vector.broadcast %350 : f32 to vector<1x256xf32>
    %354 = arith.mulf %353, %352 : vector<1x256xf32>
    %355 = arith.addf %349, %354 : vector<1x256xf32>
    %c17_165 = arith.constant 17 : index
    %356 = memref.load %arg1[%c17_165] : memref<98xf32, #tpu.memory_space<smem>>
    %c0_166 = arith.constant 0 : index
    %c0_167 = arith.constant 0 : index
    %c35_168 = arith.constant 35 : index
    %357 = vector.load %arg5[%c0_166, %c0_167, %c35_168] : memref<2x1x358xf32, #tpu.memory_space<vmem>>, vector<1x1x256xf32>
    %358 = vector.shape_cast %357 : vector<1x1x256xf32> to vector<1x256xf32>
    %359 = vector.broadcast %356 : f32 to vector<1x256xf32>
    %360 = arith.mulf %359, %358 : vector<1x256xf32>
    %361 = arith.addf %355, %360 : vector<1x256xf32>
    %c66_169 = arith.constant 66 : index
    %362 = memref.load %arg1[%c66_169] : memref<98xf32, #tpu.memory_space<smem>>
    %c1_170 = arith.constant 1 : index
    %c0_171 = arith.constant 0 : index
    %c35_172 = arith.constant 35 : index
    %363 = vector.load %arg5[%c1_170, %c0_171, %c35_172] : memref<2x1x358xf32, #tpu.memory_space<vmem>>, vector<1x1x256xf32>
    %364 = vector.shape_cast %363 : vector<1x1x256xf32> to vector<1x256xf32>
    %365 = vector.broadcast %362 : f32 to vector<1x256xf32>
    %366 = arith.mulf %365, %364 : vector<1x256xf32>
    %367 = arith.addf %361, %366 : vector<1x256xf32>
    %c24 = arith.constant 24 : index
    %368 = memref.load %arg1[%c24] : memref<98xf32, #tpu.memory_space<smem>>
    %c0_173 = arith.constant 0 : index
    %c0_174 = arith.constant 0 : index
    %c51_175 = arith.constant 51 : index
    %369 = vector.load %arg5[%c0_173, %c0_174, %c51_175] : memref<2x1x358xf32, #tpu.memory_space<vmem>>, vector<1x1x256xf32>
    %370 = vector.shape_cast %369 : vector<1x1x256xf32> to vector<1x256xf32>
    %371 = vector.broadcast %368 : f32 to vector<1x256xf32>
    %372 = arith.mulf %371, %370 : vector<1x256xf32>
    %373 = arith.addf %367, %372 : vector<1x256xf32>
    %c73 = arith.constant 73 : index
    %374 = memref.load %arg1[%c73] : memref<98xf32, #tpu.memory_space<smem>>
    %c1_176 = arith.constant 1 : index
    %c0_177 = arith.constant 0 : index
    %c51_178 = arith.constant 51 : index
    %375 = vector.load %arg5[%c1_176, %c0_177, %c51_178] : memref<2x1x358xf32, #tpu.memory_space<vmem>>, vector<1x1x256xf32>
    %376 = vector.shape_cast %375 : vector<1x1x256xf32> to vector<1x256xf32>
    %377 = vector.broadcast %374 : f32 to vector<1x256xf32>
    %378 = arith.mulf %377, %376 : vector<1x256xf32>
    %379 = arith.addf %373, %378 : vector<1x256xf32>
    %c31 = arith.constant 31 : index
    %380 = memref.load %arg1[%c31] : memref<98xf32, #tpu.memory_space<smem>>
    %c0_179 = arith.constant 0 : index
    %c0_180 = arith.constant 0 : index
    %c67 = arith.constant 67 : index
    %381 = vector.load %arg5[%c0_179, %c0_180, %c67] : memref<2x1x358xf32, #tpu.memory_space<vmem>>, vector<1x1x256xf32>
    %382 = vector.shape_cast %381 : vector<1x1x256xf32> to vector<1x256xf32>
    %383 = vector.broadcast %380 : f32 to vector<1x256xf32>
    %384 = arith.mulf %383, %382 : vector<1x256xf32>
    %385 = arith.addf %379, %384 : vector<1x256xf32>
    %c80_181 = arith.constant 80 : index
    %386 = memref.load %arg1[%c80_181] : memref<98xf32, #tpu.memory_space<smem>>
    %c1_182 = arith.constant 1 : index
    %c0_183 = arith.constant 0 : index
    %c67_184 = arith.constant 67 : index
    %387 = vector.load %arg5[%c1_182, %c0_183, %c67_184] : memref<2x1x358xf32, #tpu.memory_space<vmem>>, vector<1x1x256xf32>
    %388 = vector.shape_cast %387 : vector<1x1x256xf32> to vector<1x256xf32>
    %389 = vector.broadcast %386 : f32 to vector<1x256xf32>
    %390 = arith.mulf %389, %388 : vector<1x256xf32>
    %391 = arith.addf %385, %390 : vector<1x256xf32>
    %c38 = arith.constant 38 : index
    %392 = memref.load %arg1[%c38] : memref<98xf32, #tpu.memory_space<smem>>
    %c0_185 = arith.constant 0 : index
    %c0_186 = arith.constant 0 : index
    %c83 = arith.constant 83 : index
    %393 = vector.load %arg5[%c0_185, %c0_186, %c83] : memref<2x1x358xf32, #tpu.memory_space<vmem>>, vector<1x1x256xf32>
    %394 = vector.shape_cast %393 : vector<1x1x256xf32> to vector<1x256xf32>
    %395 = vector.broadcast %392 : f32 to vector<1x256xf32>
    %396 = arith.mulf %395, %394 : vector<1x256xf32>
    %397 = arith.addf %391, %396 : vector<1x256xf32>
    %c87 = arith.constant 87 : index
    %398 = memref.load %arg1[%c87] : memref<98xf32, #tpu.memory_space<smem>>
    %c1_187 = arith.constant 1 : index
    %c0_188 = arith.constant 0 : index
    %c83_189 = arith.constant 83 : index
    %399 = vector.load %arg5[%c1_187, %c0_188, %c83_189] : memref<2x1x358xf32, #tpu.memory_space<vmem>>, vector<1x1x256xf32>
    %400 = vector.shape_cast %399 : vector<1x1x256xf32> to vector<1x256xf32>
    %401 = vector.broadcast %398 : f32 to vector<1x256xf32>
    %402 = arith.mulf %401, %400 : vector<1x256xf32>
    %403 = arith.addf %397, %402 : vector<1x256xf32>
    %c45 = arith.constant 45 : index
    %404 = memref.load %arg1[%c45] : memref<98xf32, #tpu.memory_space<smem>>
    %c0_190 = arith.constant 0 : index
    %c0_191 = arith.constant 0 : index
    %c99 = arith.constant 99 : index
    %405 = vector.load %arg5[%c0_190, %c0_191, %c99] : memref<2x1x358xf32, #tpu.memory_space<vmem>>, vector<1x1x256xf32>
    %406 = vector.shape_cast %405 : vector<1x1x256xf32> to vector<1x256xf32>
    %407 = vector.broadcast %404 : f32 to vector<1x256xf32>
    %408 = arith.mulf %407, %406 : vector<1x256xf32>
    %409 = arith.addf %403, %408 : vector<1x256xf32>
    %c94 = arith.constant 94 : index
    %410 = memref.load %arg1[%c94] : memref<98xf32, #tpu.memory_space<smem>>
    %c1_192 = arith.constant 1 : index
    %c0_193 = arith.constant 0 : index
    %c99_194 = arith.constant 99 : index
    %411 = vector.load %arg5[%c1_192, %c0_193, %c99_194] : memref<2x1x358xf32, #tpu.memory_space<vmem>>, vector<1x1x256xf32>
    %412 = vector.shape_cast %411 : vector<1x1x256xf32> to vector<1x256xf32>
    %413 = vector.broadcast %410 : f32 to vector<1x256xf32>
    %414 = arith.mulf %413, %412 : vector<1x256xf32>
    %415 = arith.addf %409, %414 : vector<1x256xf32>
    %416 = arith.addf %330, %415 : vector<1x256xf32>
    %cst_195 = arith.constant 0.000000e+00 : f32
    %417 = vector.broadcast %cst_195 : f32 to vector<1x256xf32>
    %c4 = arith.constant 4 : index
    %418 = memref.load %arg1[%c4] : memref<98xf32, #tpu.memory_space<smem>>
    %c0_196 = arith.constant 0 : index
    %c0_197 = arith.constant 0 : index
    %c4_198 = arith.constant 4 : index
    %419 = vector.load %arg5[%c0_196, %c0_197, %c4_198] : memref<2x1x358xf32, #tpu.memory_space<vmem>>, vector<1x1x256xf32>
    %420 = vector.shape_cast %419 : vector<1x1x256xf32> to vector<1x256xf32>
    %421 = vector.broadcast %418 : f32 to vector<1x256xf32>
    %422 = arith.mulf %421, %420 : vector<1x256xf32>
    %423 = arith.addf %417, %422 : vector<1x256xf32>
    %c53 = arith.constant 53 : index
    %424 = memref.load %arg1[%c53] : memref<98xf32, #tpu.memory_space<smem>>
    %c1_199 = arith.constant 1 : index
    %c0_200 = arith.constant 0 : index
    %c4_201 = arith.constant 4 : index
    %425 = vector.load %arg5[%c1_199, %c0_200, %c4_201] : memref<2x1x358xf32, #tpu.memory_space<vmem>>, vector<1x1x256xf32>
    %426 = vector.shape_cast %425 : vector<1x1x256xf32> to vector<1x256xf32>
    %427 = vector.broadcast %424 : f32 to vector<1x256xf32>
    %428 = arith.mulf %427, %426 : vector<1x256xf32>
    %429 = arith.addf %423, %428 : vector<1x256xf32>
    %c11 = arith.constant 11 : index
    %430 = memref.load %arg1[%c11] : memref<98xf32, #tpu.memory_space<smem>>
    %c0_202 = arith.constant 0 : index
    %c0_203 = arith.constant 0 : index
    %c20 = arith.constant 20 : index
    %431 = vector.load %arg5[%c0_202, %c0_203, %c20] : memref<2x1x358xf32, #tpu.memory_space<vmem>>, vector<1x1x256xf32>
    %432 = vector.shape_cast %431 : vector<1x1x256xf32> to vector<1x256xf32>
    %433 = vector.broadcast %430 : f32 to vector<1x256xf32>
    %434 = arith.mulf %433, %432 : vector<1x256xf32>
    %435 = arith.addf %429, %434 : vector<1x256xf32>
    %c60 = arith.constant 60 : index
    %436 = memref.load %arg1[%c60] : memref<98xf32, #tpu.memory_space<smem>>
    %c1_204 = arith.constant 1 : index
    %c0_205 = arith.constant 0 : index
    %c20_206 = arith.constant 20 : index
    %437 = vector.load %arg5[%c1_204, %c0_205, %c20_206] : memref<2x1x358xf32, #tpu.memory_space<vmem>>, vector<1x1x256xf32>
    %438 = vector.shape_cast %437 : vector<1x1x256xf32> to vector<1x256xf32>
    %439 = vector.broadcast %436 : f32 to vector<1x256xf32>
    %440 = arith.mulf %439, %438 : vector<1x256xf32>
    %441 = arith.addf %435, %440 : vector<1x256xf32>
    %c18_207 = arith.constant 18 : index
    %442 = memref.load %arg1[%c18_207] : memref<98xf32, #tpu.memory_space<smem>>
    %c0_208 = arith.constant 0 : index
    %c0_209 = arith.constant 0 : index
    %c36_210 = arith.constant 36 : index
    %443 = vector.load %arg5[%c0_208, %c0_209, %c36_210] : memref<2x1x358xf32, #tpu.memory_space<vmem>>, vector<1x1x256xf32>
    %444 = vector.shape_cast %443 : vector<1x1x256xf32> to vector<1x256xf32>
    %445 = vector.broadcast %442 : f32 to vector<1x256xf32>
    %446 = arith.mulf %445, %444 : vector<1x256xf32>
    %447 = arith.addf %441, %446 : vector<1x256xf32>
    %c67_211 = arith.constant 67 : index
    %448 = memref.load %arg1[%c67_211] : memref<98xf32, #tpu.memory_space<smem>>
    %c1_212 = arith.constant 1 : index
    %c0_213 = arith.constant 0 : index
    %c36_214 = arith.constant 36 : index
    %449 = vector.load %arg5[%c1_212, %c0_213, %c36_214] : memref<2x1x358xf32, #tpu.memory_space<vmem>>, vector<1x1x256xf32>
    %450 = vector.shape_cast %449 : vector<1x1x256xf32> to vector<1x256xf32>
    %451 = vector.broadcast %448 : f32 to vector<1x256xf32>
    %452 = arith.mulf %451, %450 : vector<1x256xf32>
    %453 = arith.addf %447, %452 : vector<1x256xf32>
    %c25 = arith.constant 25 : index
    %454 = memref.load %arg1[%c25] : memref<98xf32, #tpu.memory_space<smem>>
    %c0_215 = arith.constant 0 : index
    %c0_216 = arith.constant 0 : index
    %c52_217 = arith.constant 52 : index
    %455 = vector.load %arg5[%c0_215, %c0_216, %c52_217] : memref<2x1x358xf32, #tpu.memory_space<vmem>>, vector<1x1x256xf32>
    %456 = vector.shape_cast %455 : vector<1x1x256xf32> to vector<1x256xf32>
    %457 = vector.broadcast %454 : f32 to vector<1x256xf32>
    %458 = arith.mulf %457, %456 : vector<1x256xf32>
    %459 = arith.addf %453, %458 : vector<1x256xf32>
    %c74 = arith.constant 74 : index
    %460 = memref.load %arg1[%c74] : memref<98xf32, #tpu.memory_space<smem>>
    %c1_218 = arith.constant 1 : index
    %c0_219 = arith.constant 0 : index
    %c52_220 = arith.constant 52 : index
    %461 = vector.load %arg5[%c1_218, %c0_219, %c52_220] : memref<2x1x358xf32, #tpu.memory_space<vmem>>, vector<1x1x256xf32>
    %462 = vector.shape_cast %461 : vector<1x1x256xf32> to vector<1x256xf32>
    %463 = vector.broadcast %460 : f32 to vector<1x256xf32>
    %464 = arith.mulf %463, %462 : vector<1x256xf32>
    %465 = arith.addf %459, %464 : vector<1x256xf32>
    %c32_221 = arith.constant 32 : index
    %466 = memref.load %arg1[%c32_221] : memref<98xf32, #tpu.memory_space<smem>>
    %c0_222 = arith.constant 0 : index
    %c0_223 = arith.constant 0 : index
    %c68 = arith.constant 68 : index
    %467 = vector.load %arg5[%c0_222, %c0_223, %c68] : memref<2x1x358xf32, #tpu.memory_space<vmem>>, vector<1x1x256xf32>
    %468 = vector.shape_cast %467 : vector<1x1x256xf32> to vector<1x256xf32>
    %469 = vector.broadcast %466 : f32 to vector<1x256xf32>
    %470 = arith.mulf %469, %468 : vector<1x256xf32>
    %471 = arith.addf %465, %470 : vector<1x256xf32>
    %c81_224 = arith.constant 81 : index
    %472 = memref.load %arg1[%c81_224] : memref<98xf32, #tpu.memory_space<smem>>
    %c1_225 = arith.constant 1 : index
    %c0_226 = arith.constant 0 : index
    %c68_227 = arith.constant 68 : index
    %473 = vector.load %arg5[%c1_225, %c0_226, %c68_227] : memref<2x1x358xf32, #tpu.memory_space<vmem>>, vector<1x1x256xf32>
    %474 = vector.shape_cast %473 : vector<1x1x256xf32> to vector<1x256xf32>
    %475 = vector.broadcast %472 : f32 to vector<1x256xf32>
    %476 = arith.mulf %475, %474 : vector<1x256xf32>
    %477 = arith.addf %471, %476 : vector<1x256xf32>
    %c39 = arith.constant 39 : index
    %478 = memref.load %arg1[%c39] : memref<98xf32, #tpu.memory_space<smem>>
    %c0_228 = arith.constant 0 : index
    %c0_229 = arith.constant 0 : index
    %c84_230 = arith.constant 84 : index
    %479 = vector.load %arg5[%c0_228, %c0_229, %c84_230] : memref<2x1x358xf32, #tpu.memory_space<vmem>>, vector<1x1x256xf32>
    %480 = vector.shape_cast %479 : vector<1x1x256xf32> to vector<1x256xf32>
    %481 = vector.broadcast %478 : f32 to vector<1x256xf32>
    %482 = arith.mulf %481, %480 : vector<1x256xf32>
    %483 = arith.addf %477, %482 : vector<1x256xf32>
    %c88 = arith.constant 88 : index
    %484 = memref.load %arg1[%c88] : memref<98xf32, #tpu.memory_space<smem>>
    %c1_231 = arith.constant 1 : index
    %c0_232 = arith.constant 0 : index
    %c84_233 = arith.constant 84 : index
    %485 = vector.load %arg5[%c1_231, %c0_232, %c84_233] : memref<2x1x358xf32, #tpu.memory_space<vmem>>, vector<1x1x256xf32>
    %486 = vector.shape_cast %485 : vector<1x1x256xf32> to vector<1x256xf32>
    %487 = vector.broadcast %484 : f32 to vector<1x256xf32>
    %488 = arith.mulf %487, %486 : vector<1x256xf32>
    %489 = arith.addf %483, %488 : vector<1x256xf32>
    %c46 = arith.constant 46 : index
    %490 = memref.load %arg1[%c46] : memref<98xf32, #tpu.memory_space<smem>>
    %c0_234 = arith.constant 0 : index
    %c0_235 = arith.constant 0 : index
    %c100 = arith.constant 100 : index
    %491 = vector.load %arg5[%c0_234, %c0_235, %c100] : memref<2x1x358xf32, #tpu.memory_space<vmem>>, vector<1x1x256xf32>
    %492 = vector.shape_cast %491 : vector<1x1x256xf32> to vector<1x256xf32>
    %493 = vector.broadcast %490 : f32 to vector<1x256xf32>
    %494 = arith.mulf %493, %492 : vector<1x256xf32>
    %495 = arith.addf %489, %494 : vector<1x256xf32>
    %c95 = arith.constant 95 : index
    %496 = memref.load %arg1[%c95] : memref<98xf32, #tpu.memory_space<smem>>
    %c1_236 = arith.constant 1 : index
    %c0_237 = arith.constant 0 : index
    %c100_238 = arith.constant 100 : index
    %497 = vector.load %arg5[%c1_236, %c0_237, %c100_238] : memref<2x1x358xf32, #tpu.memory_space<vmem>>, vector<1x1x256xf32>
    %498 = vector.shape_cast %497 : vector<1x1x256xf32> to vector<1x256xf32>
    %499 = vector.broadcast %496 : f32 to vector<1x256xf32>
    %500 = arith.mulf %499, %498 : vector<1x256xf32>
    %501 = arith.addf %495, %500 : vector<1x256xf32>
    %c1_i32_239 = arith.constant 1 : i32
    %502 = vector.broadcast %c1_i32_239 : i32 to vector<1x256xi32>
    %503 = arith.addi %35, %502 : vector<1x256xi32>
    %c0_i32_240 = arith.constant 0 : i32
    %504 = vector.broadcast %c0_i32_240 : i32 to vector<1x256xi32>
    %505 = arith.cmpi sge, %503, %504 : vector<1x256xi32>
    %c1_i32_241 = arith.constant 1 : i32
    %506 = vector.broadcast %c1_i32_241 : i32 to vector<1x256xi32>
    %507 = arith.addi %35, %506 : vector<1x256xi32>
    %c16_i32_242 = arith.constant 16 : i32
    %508 = vector.broadcast %c16_i32_242 : i32 to vector<1x256xi32>
    %509 = arith.cmpi slt, %507, %508 : vector<1x256xi32>
    %510 = arith.andi %505, %509 : vector<1x256xi1>
    %cst_243 = arith.constant 0.000000e+00 : f32
    %511 = vector.broadcast %cst_243 : f32 to vector<1x256xf32>
    %512 = arith.select %510, %501, %511 : vector<1x256xi1>, vector<1x256xf32>
    %513 = arith.addf %416, %512 : vector<1x256xf32>
    %cst_244 = arith.constant 0.000000e+00 : f32
    %514 = vector.broadcast %cst_244 : f32 to vector<1x256xf32>
    %c5 = arith.constant 5 : index
    %515 = memref.load %arg1[%c5] : memref<98xf32, #tpu.memory_space<smem>>
    %c0_245 = arith.constant 0 : index
    %c0_246 = arith.constant 0 : index
    %c5_247 = arith.constant 5 : index
    %516 = vector.load %arg5[%c0_245, %c0_246, %c5_247] : memref<2x1x358xf32, #tpu.memory_space<vmem>>, vector<1x1x256xf32>
    %517 = vector.shape_cast %516 : vector<1x1x256xf32> to vector<1x256xf32>
    %518 = vector.broadcast %515 : f32 to vector<1x256xf32>
    %519 = arith.mulf %518, %517 : vector<1x256xf32>
    %520 = arith.addf %514, %519 : vector<1x256xf32>
    %c54 = arith.constant 54 : index
    %521 = memref.load %arg1[%c54] : memref<98xf32, #tpu.memory_space<smem>>
    %c1_248 = arith.constant 1 : index
    %c0_249 = arith.constant 0 : index
    %c5_250 = arith.constant 5 : index
    %522 = vector.load %arg5[%c1_248, %c0_249, %c5_250] : memref<2x1x358xf32, #tpu.memory_space<vmem>>, vector<1x1x256xf32>
    %523 = vector.shape_cast %522 : vector<1x1x256xf32> to vector<1x256xf32>
    %524 = vector.broadcast %521 : f32 to vector<1x256xf32>
    %525 = arith.mulf %524, %523 : vector<1x256xf32>
    %526 = arith.addf %520, %525 : vector<1x256xf32>
    %c12 = arith.constant 12 : index
    %527 = memref.load %arg1[%c12] : memref<98xf32, #tpu.memory_space<smem>>
    %c0_251 = arith.constant 0 : index
    %c0_252 = arith.constant 0 : index
    %c21_253 = arith.constant 21 : index
    %528 = vector.load %arg5[%c0_251, %c0_252, %c21_253] : memref<2x1x358xf32, #tpu.memory_space<vmem>>, vector<1x1x256xf32>
    %529 = vector.shape_cast %528 : vector<1x1x256xf32> to vector<1x256xf32>
    %530 = vector.broadcast %527 : f32 to vector<1x256xf32>
    %531 = arith.mulf %530, %529 : vector<1x256xf32>
    %532 = arith.addf %526, %531 : vector<1x256xf32>
    %c61 = arith.constant 61 : index
    %533 = memref.load %arg1[%c61] : memref<98xf32, #tpu.memory_space<smem>>
    %c1_254 = arith.constant 1 : index
    %c0_255 = arith.constant 0 : index
    %c21_256 = arith.constant 21 : index
    %534 = vector.load %arg5[%c1_254, %c0_255, %c21_256] : memref<2x1x358xf32, #tpu.memory_space<vmem>>, vector<1x1x256xf32>
    %535 = vector.shape_cast %534 : vector<1x1x256xf32> to vector<1x256xf32>
    %536 = vector.broadcast %533 : f32 to vector<1x256xf32>
    %537 = arith.mulf %536, %535 : vector<1x256xf32>
    %538 = arith.addf %532, %537 : vector<1x256xf32>
    %c19_257 = arith.constant 19 : index
    %539 = memref.load %arg1[%c19_257] : memref<98xf32, #tpu.memory_space<smem>>
    %c0_258 = arith.constant 0 : index
    %c0_259 = arith.constant 0 : index
    %c37_260 = arith.constant 37 : index
    %540 = vector.load %arg5[%c0_258, %c0_259, %c37_260] : memref<2x1x358xf32, #tpu.memory_space<vmem>>, vector<1x1x256xf32>
    %541 = vector.shape_cast %540 : vector<1x1x256xf32> to vector<1x256xf32>
    %542 = vector.broadcast %539 : f32 to vector<1x256xf32>
    %543 = arith.mulf %542, %541 : vector<1x256xf32>
    %544 = arith.addf %538, %543 : vector<1x256xf32>
    %c68_261 = arith.constant 68 : index
    %545 = memref.load %arg1[%c68_261] : memref<98xf32, #tpu.memory_space<smem>>
    %c1_262 = arith.constant 1 : index
    %c0_263 = arith.constant 0 : index
    %c37_264 = arith.constant 37 : index
    %546 = vector.load %arg5[%c1_262, %c0_263, %c37_264] : memref<2x1x358xf32, #tpu.memory_space<vmem>>, vector<1x1x256xf32>
    %547 = vector.shape_cast %546 : vector<1x1x256xf32> to vector<1x256xf32>
    %548 = vector.broadcast %545 : f32 to vector<1x256xf32>
    %549 = arith.mulf %548, %547 : vector<1x256xf32>
    %550 = arith.addf %544, %549 : vector<1x256xf32>
    %c26 = arith.constant 26 : index
    %551 = memref.load %arg1[%c26] : memref<98xf32, #tpu.memory_space<smem>>
    %c0_265 = arith.constant 0 : index
    %c0_266 = arith.constant 0 : index
    %c53_267 = arith.constant 53 : index
    %552 = vector.load %arg5[%c0_265, %c0_266, %c53_267] : memref<2x1x358xf32, #tpu.memory_space<vmem>>, vector<1x1x256xf32>
    %553 = vector.shape_cast %552 : vector<1x1x256xf32> to vector<1x256xf32>
    %554 = vector.broadcast %551 : f32 to vector<1x256xf32>
    %555 = arith.mulf %554, %553 : vector<1x256xf32>
    %556 = arith.addf %550, %555 : vector<1x256xf32>
    %c75 = arith.constant 75 : index
    %557 = memref.load %arg1[%c75] : memref<98xf32, #tpu.memory_space<smem>>
    %c1_268 = arith.constant 1 : index
    %c0_269 = arith.constant 0 : index
    %c53_270 = arith.constant 53 : index
    %558 = vector.load %arg5[%c1_268, %c0_269, %c53_270] : memref<2x1x358xf32, #tpu.memory_space<vmem>>, vector<1x1x256xf32>
    %559 = vector.shape_cast %558 : vector<1x1x256xf32> to vector<1x256xf32>
    %560 = vector.broadcast %557 : f32 to vector<1x256xf32>
    %561 = arith.mulf %560, %559 : vector<1x256xf32>
    %562 = arith.addf %556, %561 : vector<1x256xf32>
    %c33_271 = arith.constant 33 : index
    %563 = memref.load %arg1[%c33_271] : memref<98xf32, #tpu.memory_space<smem>>
    %c0_272 = arith.constant 0 : index
    %c0_273 = arith.constant 0 : index
    %c69 = arith.constant 69 : index
    %564 = vector.load %arg5[%c0_272, %c0_273, %c69] : memref<2x1x358xf32, #tpu.memory_space<vmem>>, vector<1x1x256xf32>
    %565 = vector.shape_cast %564 : vector<1x1x256xf32> to vector<1x256xf32>
    %566 = vector.broadcast %563 : f32 to vector<1x256xf32>
    %567 = arith.mulf %566, %565 : vector<1x256xf32>
    %568 = arith.addf %562, %567 : vector<1x256xf32>
    %c82_274 = arith.constant 82 : index
    %569 = memref.load %arg1[%c82_274] : memref<98xf32, #tpu.memory_space<smem>>
    %c1_275 = arith.constant 1 : index
    %c0_276 = arith.constant 0 : index
    %c69_277 = arith.constant 69 : index
    %570 = vector.load %arg5[%c1_275, %c0_276, %c69_277] : memref<2x1x358xf32, #tpu.memory_space<vmem>>, vector<1x1x256xf32>
    %571 = vector.shape_cast %570 : vector<1x1x256xf32> to vector<1x256xf32>
    %572 = vector.broadcast %569 : f32 to vector<1x256xf32>
    %573 = arith.mulf %572, %571 : vector<1x256xf32>
    %574 = arith.addf %568, %573 : vector<1x256xf32>
    %c40 = arith.constant 40 : index
    %575 = memref.load %arg1[%c40] : memref<98xf32, #tpu.memory_space<smem>>
    %c0_278 = arith.constant 0 : index
    %c0_279 = arith.constant 0 : index
    %c85_280 = arith.constant 85 : index
    %576 = vector.load %arg5[%c0_278, %c0_279, %c85_280] : memref<2x1x358xf32, #tpu.memory_space<vmem>>, vector<1x1x256xf32>
    %577 = vector.shape_cast %576 : vector<1x1x256xf32> to vector<1x256xf32>
    %578 = vector.broadcast %575 : f32 to vector<1x256xf32>
    %579 = arith.mulf %578, %577 : vector<1x256xf32>
    %580 = arith.addf %574, %579 : vector<1x256xf32>
    %c89 = arith.constant 89 : index
    %581 = memref.load %arg1[%c89] : memref<98xf32, #tpu.memory_space<smem>>
    %c1_281 = arith.constant 1 : index
    %c0_282 = arith.constant 0 : index
    %c85_283 = arith.constant 85 : index
    %582 = vector.load %arg5[%c1_281, %c0_282, %c85_283] : memref<2x1x358xf32, #tpu.memory_space<vmem>>, vector<1x1x256xf32>
    %583 = vector.shape_cast %582 : vector<1x1x256xf32> to vector<1x256xf32>
    %584 = vector.broadcast %581 : f32 to vector<1x256xf32>
    %585 = arith.mulf %584, %583 : vector<1x256xf32>
    %586 = arith.addf %580, %585 : vector<1x256xf32>
    %c47 = arith.constant 47 : index
    %587 = memref.load %arg1[%c47] : memref<98xf32, #tpu.memory_space<smem>>
    %c0_284 = arith.constant 0 : index
    %c0_285 = arith.constant 0 : index
    %c101 = arith.constant 101 : index
    %588 = vector.load %arg5[%c0_284, %c0_285, %c101] : memref<2x1x358xf32, #tpu.memory_space<vmem>>, vector<1x1x256xf32>
    %589 = vector.shape_cast %588 : vector<1x1x256xf32> to vector<1x256xf32>
    %590 = vector.broadcast %587 : f32 to vector<1x256xf32>
    %591 = arith.mulf %590, %589 : vector<1x256xf32>
    %592 = arith.addf %586, %591 : vector<1x256xf32>
    %c96_286 = arith.constant 96 : index
    %593 = memref.load %arg1[%c96_286] : memref<98xf32, #tpu.memory_space<smem>>
    %c1_287 = arith.constant 1 : index
    %c0_288 = arith.constant 0 : index
    %c101_289 = arith.constant 101 : index
    %594 = vector.load %arg5[%c1_287, %c0_288, %c101_289] : memref<2x1x358xf32, #tpu.memory_space<vmem>>, vector<1x1x256xf32>
    %595 = vector.shape_cast %594 : vector<1x1x256xf32> to vector<1x256xf32>
    %596 = vector.broadcast %593 : f32 to vector<1x256xf32>
    %597 = arith.mulf %596, %595 : vector<1x256xf32>
    %598 = arith.addf %592, %597 : vector<1x256xf32>
    %c2_i32 = arith.constant 2 : i32
    %599 = vector.broadcast %c2_i32 : i32 to vector<1x256xi32>
    %600 = arith.addi %35, %599 : vector<1x256xi32>
    %c0_i32_290 = arith.constant 0 : i32
    %601 = vector.broadcast %c0_i32_290 : i32 to vector<1x256xi32>
    %602 = arith.cmpi sge, %600, %601 : vector<1x256xi32>
    %c2_i32_291 = arith.constant 2 : i32
    %603 = vector.broadcast %c2_i32_291 : i32 to vector<1x256xi32>
    %604 = arith.addi %35, %603 : vector<1x256xi32>
    %c16_i32_292 = arith.constant 16 : i32
    %605 = vector.broadcast %c16_i32_292 : i32 to vector<1x256xi32>
    %606 = arith.cmpi slt, %604, %605 : vector<1x256xi32>
    %607 = arith.andi %602, %606 : vector<1x256xi1>
    %cst_293 = arith.constant 0.000000e+00 : f32
    %608 = vector.broadcast %cst_293 : f32 to vector<1x256xf32>
    %609 = arith.select %607, %598, %608 : vector<1x256xi1>, vector<1x256xf32>
    %610 = arith.addf %513, %609 : vector<1x256xf32>
    %cst_294 = arith.constant 0.000000e+00 : f32
    %611 = vector.broadcast %cst_294 : f32 to vector<1x256xf32>
    %c6 = arith.constant 6 : index
    %612 = memref.load %arg1[%c6] : memref<98xf32, #tpu.memory_space<smem>>
    %c0_295 = arith.constant 0 : index
    %c0_296 = arith.constant 0 : index
    %c6_297 = arith.constant 6 : index
    %613 = vector.load %arg5[%c0_295, %c0_296, %c6_297] : memref<2x1x358xf32, #tpu.memory_space<vmem>>, vector<1x1x256xf32>
    %614 = vector.shape_cast %613 : vector<1x1x256xf32> to vector<1x256xf32>
    %615 = vector.broadcast %612 : f32 to vector<1x256xf32>
    %616 = arith.mulf %615, %614 : vector<1x256xf32>
    %617 = arith.addf %611, %616 : vector<1x256xf32>
    %c55 = arith.constant 55 : index
    %618 = memref.load %arg1[%c55] : memref<98xf32, #tpu.memory_space<smem>>
    %c1_298 = arith.constant 1 : index
    %c0_299 = arith.constant 0 : index
    %c6_300 = arith.constant 6 : index
    %619 = vector.load %arg5[%c1_298, %c0_299, %c6_300] : memref<2x1x358xf32, #tpu.memory_space<vmem>>, vector<1x1x256xf32>
    %620 = vector.shape_cast %619 : vector<1x1x256xf32> to vector<1x256xf32>
    %621 = vector.broadcast %618 : f32 to vector<1x256xf32>
    %622 = arith.mulf %621, %620 : vector<1x256xf32>
    %623 = arith.addf %617, %622 : vector<1x256xf32>
    %c13 = arith.constant 13 : index
    %624 = memref.load %arg1[%c13] : memref<98xf32, #tpu.memory_space<smem>>
    %c0_301 = arith.constant 0 : index
    %c0_302 = arith.constant 0 : index
    %c22_303 = arith.constant 22 : index
    %625 = vector.load %arg5[%c0_301, %c0_302, %c22_303] : memref<2x1x358xf32, #tpu.memory_space<vmem>>, vector<1x1x256xf32>
    %626 = vector.shape_cast %625 : vector<1x1x256xf32> to vector<1x256xf32>
    %627 = vector.broadcast %624 : f32 to vector<1x256xf32>
    %628 = arith.mulf %627, %626 : vector<1x256xf32>
    %629 = arith.addf %623, %628 : vector<1x256xf32>
    %c62 = arith.constant 62 : index
    %630 = memref.load %arg1[%c62] : memref<98xf32, #tpu.memory_space<smem>>
    %c1_304 = arith.constant 1 : index
    %c0_305 = arith.constant 0 : index
    %c22_306 = arith.constant 22 : index
    %631 = vector.load %arg5[%c1_304, %c0_305, %c22_306] : memref<2x1x358xf32, #tpu.memory_space<vmem>>, vector<1x1x256xf32>
    %632 = vector.shape_cast %631 : vector<1x1x256xf32> to vector<1x256xf32>
    %633 = vector.broadcast %630 : f32 to vector<1x256xf32>
    %634 = arith.mulf %633, %632 : vector<1x256xf32>
    %635 = arith.addf %629, %634 : vector<1x256xf32>
    %c20_307 = arith.constant 20 : index
    %636 = memref.load %arg1[%c20_307] : memref<98xf32, #tpu.memory_space<smem>>
    %c0_308 = arith.constant 0 : index
    %c0_309 = arith.constant 0 : index
    %c38_310 = arith.constant 38 : index
    %637 = vector.load %arg5[%c0_308, %c0_309, %c38_310] : memref<2x1x358xf32, #tpu.memory_space<vmem>>, vector<1x1x256xf32>
    %638 = vector.shape_cast %637 : vector<1x1x256xf32> to vector<1x256xf32>
    %639 = vector.broadcast %636 : f32 to vector<1x256xf32>
    %640 = arith.mulf %639, %638 : vector<1x256xf32>
    %641 = arith.addf %635, %640 : vector<1x256xf32>
    %c69_311 = arith.constant 69 : index
    %642 = memref.load %arg1[%c69_311] : memref<98xf32, #tpu.memory_space<smem>>
    %c1_312 = arith.constant 1 : index
    %c0_313 = arith.constant 0 : index
    %c38_314 = arith.constant 38 : index
    %643 = vector.load %arg5[%c1_312, %c0_313, %c38_314] : memref<2x1x358xf32, #tpu.memory_space<vmem>>, vector<1x1x256xf32>
    %644 = vector.shape_cast %643 : vector<1x1x256xf32> to vector<1x256xf32>
    %645 = vector.broadcast %642 : f32 to vector<1x256xf32>
    %646 = arith.mulf %645, %644 : vector<1x256xf32>
    %647 = arith.addf %641, %646 : vector<1x256xf32>
    %c27 = arith.constant 27 : index
    %648 = memref.load %arg1[%c27] : memref<98xf32, #tpu.memory_space<smem>>
    %c0_315 = arith.constant 0 : index
    %c0_316 = arith.constant 0 : index
    %c54_317 = arith.constant 54 : index
    %649 = vector.load %arg5[%c0_315, %c0_316, %c54_317] : memref<2x1x358xf32, #tpu.memory_space<vmem>>, vector<1x1x256xf32>
    %650 = vector.shape_cast %649 : vector<1x1x256xf32> to vector<1x256xf32>
    %651 = vector.broadcast %648 : f32 to vector<1x256xf32>
    %652 = arith.mulf %651, %650 : vector<1x256xf32>
    %653 = arith.addf %647, %652 : vector<1x256xf32>
    %c76 = arith.constant 76 : index
    %654 = memref.load %arg1[%c76] : memref<98xf32, #tpu.memory_space<smem>>
    %c1_318 = arith.constant 1 : index
    %c0_319 = arith.constant 0 : index
    %c54_320 = arith.constant 54 : index
    %655 = vector.load %arg5[%c1_318, %c0_319, %c54_320] : memref<2x1x358xf32, #tpu.memory_space<vmem>>, vector<1x1x256xf32>
    %656 = vector.shape_cast %655 : vector<1x1x256xf32> to vector<1x256xf32>
    %657 = vector.broadcast %654 : f32 to vector<1x256xf32>
    %658 = arith.mulf %657, %656 : vector<1x256xf32>
    %659 = arith.addf %653, %658 : vector<1x256xf32>
    %c34_321 = arith.constant 34 : index
    %660 = memref.load %arg1[%c34_321] : memref<98xf32, #tpu.memory_space<smem>>
    %c0_322 = arith.constant 0 : index
    %c0_323 = arith.constant 0 : index
    %c70_324 = arith.constant 70 : index
    %661 = vector.load %arg5[%c0_322, %c0_323, %c70_324] : memref<2x1x358xf32, #tpu.memory_space<vmem>>, vector<1x1x256xf32>
    %662 = vector.shape_cast %661 : vector<1x1x256xf32> to vector<1x256xf32>
    %663 = vector.broadcast %660 : f32 to vector<1x256xf32>
    %664 = arith.mulf %663, %662 : vector<1x256xf32>
    %665 = arith.addf %659, %664 : vector<1x256xf32>
    %c83_325 = arith.constant 83 : index
    %666 = memref.load %arg1[%c83_325] : memref<98xf32, #tpu.memory_space<smem>>
    %c1_326 = arith.constant 1 : index
    %c0_327 = arith.constant 0 : index
    %c70_328 = arith.constant 70 : index
    %667 = vector.load %arg5[%c1_326, %c0_327, %c70_328] : memref<2x1x358xf32, #tpu.memory_space<vmem>>, vector<1x1x256xf32>
    %668 = vector.shape_cast %667 : vector<1x1x256xf32> to vector<1x256xf32>
    %669 = vector.broadcast %666 : f32 to vector<1x256xf32>
    %670 = arith.mulf %669, %668 : vector<1x256xf32>
    %671 = arith.addf %665, %670 : vector<1x256xf32>
    %c41 = arith.constant 41 : index
    %672 = memref.load %arg1[%c41] : memref<98xf32, #tpu.memory_space<smem>>
    %c0_329 = arith.constant 0 : index
    %c0_330 = arith.constant 0 : index
    %c86_331 = arith.constant 86 : index
    %673 = vector.load %arg5[%c0_329, %c0_330, %c86_331] : memref<2x1x358xf32, #tpu.memory_space<vmem>>, vector<1x1x256xf32>
    %674 = vector.shape_cast %673 : vector<1x1x256xf32> to vector<1x256xf32>
    %675 = vector.broadcast %672 : f32 to vector<1x256xf32>
    %676 = arith.mulf %675, %674 : vector<1x256xf32>
    %677 = arith.addf %671, %676 : vector<1x256xf32>
    %c90 = arith.constant 90 : index
    %678 = memref.load %arg1[%c90] : memref<98xf32, #tpu.memory_space<smem>>
    %c1_332 = arith.constant 1 : index
    %c0_333 = arith.constant 0 : index
    %c86_334 = arith.constant 86 : index
    %679 = vector.load %arg5[%c1_332, %c0_333, %c86_334] : memref<2x1x358xf32, #tpu.memory_space<vmem>>, vector<1x1x256xf32>
    %680 = vector.shape_cast %679 : vector<1x1x256xf32> to vector<1x256xf32>
    %681 = vector.broadcast %678 : f32 to vector<1x256xf32>
    %682 = arith.mulf %681, %680 : vector<1x256xf32>
    %683 = arith.addf %677, %682 : vector<1x256xf32>
    %c48_335 = arith.constant 48 : index
    %684 = memref.load %arg1[%c48_335] : memref<98xf32, #tpu.memory_space<smem>>
    %c0_336 = arith.constant 0 : index
    %c0_337 = arith.constant 0 : index
    %c102 = arith.constant 102 : index
    %685 = vector.load %arg5[%c0_336, %c0_337, %c102] : memref<2x1x358xf32, #tpu.memory_space<vmem>>, vector<1x1x256xf32>
    %686 = vector.shape_cast %685 : vector<1x1x256xf32> to vector<1x256xf32>
    %687 = vector.broadcast %684 : f32 to vector<1x256xf32>
    %688 = arith.mulf %687, %686 : vector<1x256xf32>
    %689 = arith.addf %683, %688 : vector<1x256xf32>
    %c97_338 = arith.constant 97 : index
    %690 = memref.load %arg1[%c97_338] : memref<98xf32, #tpu.memory_space<smem>>
    %c1_339 = arith.constant 1 : index
    %c0_340 = arith.constant 0 : index
    %c102_341 = arith.constant 102 : index
    %691 = vector.load %arg5[%c1_339, %c0_340, %c102_341] : memref<2x1x358xf32, #tpu.memory_space<vmem>>, vector<1x1x256xf32>
    %692 = vector.shape_cast %691 : vector<1x1x256xf32> to vector<1x256xf32>
    %693 = vector.broadcast %690 : f32 to vector<1x256xf32>
    %694 = arith.mulf %693, %692 : vector<1x256xf32>
    %695 = arith.addf %689, %694 : vector<1x256xf32>
    %c3_i32 = arith.constant 3 : i32
    %696 = vector.broadcast %c3_i32 : i32 to vector<1x256xi32>
    %697 = arith.addi %35, %696 : vector<1x256xi32>
    %c0_i32_342 = arith.constant 0 : i32
    %698 = vector.broadcast %c0_i32_342 : i32 to vector<1x256xi32>
    %699 = arith.cmpi sge, %697, %698 : vector<1x256xi32>
    %c3_i32_343 = arith.constant 3 : i32
    %700 = vector.broadcast %c3_i32_343 : i32 to vector<1x256xi32>
    %701 = arith.addi %35, %700 : vector<1x256xi32>
    %c16_i32_344 = arith.constant 16 : i32
    %702 = vector.broadcast %c16_i32_344 : i32 to vector<1x256xi32>
    %703 = arith.cmpi slt, %701, %702 : vector<1x256xi32>
    %704 = arith.andi %699, %703 : vector<1x256xi1>
    %cst_345 = arith.constant 0.000000e+00 : f32
    %705 = vector.broadcast %cst_345 : f32 to vector<1x256xf32>
    %706 = arith.select %704, %695, %705 : vector<1x256xi1>, vector<1x256xf32>
    %707 = arith.addf %610, %706 : vector<1x256xf32>
    %708 = arith.negf %707 : vector<1x256xf32>
    %709 = math.exp %708 : vector<1x256xf32>
    %cst_346 = arith.constant 1.000000e+00 : f32
    %710 = vector.broadcast %cst_346 : f32 to vector<1x256xf32>
    %711 = arith.addf %710, %709 : vector<1x256xf32>
    %712 = arith.divf %710, %711 : vector<1x256xf32>
    %713 = vector.shape_cast %712 : vector<1x256xf32> to vector<1x1x256xf32>
    %c0_347 = arith.constant 0 : index
    %c0_348 = arith.constant 0 : index
    %c0_349 = arith.constant 0 : index
    %714 = vector.load %arg3[%c0_347, %c0_348, %c0_349] : memref<1x4x256xf32, #tpu.memory_space<vmem>>, vector<1x4x256xf32>
    %715 = vector.broadcast %713 : vector<1x1x256xf32> to vector<1x4x256xf32>
    %716 = arith.mulf %714, %715 : vector<1x4x256xf32>
    %c0_350 = arith.constant 0 : index
    %c0_351 = arith.constant 0 : index
    %c0_352 = arith.constant 0 : index
    %717 = vector.load %arg4[%c0_350, %c0_351, %c0_352] : memref<1x4x256xf32, #tpu.memory_space<vmem>>, vector<1x4x256xf32>
    tpu.vector_store %arg4[%c0_350, %c0_351, %c0_352], %716 {strides = array<i32>} : memref<1x4x256xf32, #tpu.memory_space<vmem>>, vector<1x4x256xf32>,
    return
  }
  func.func @transform_0(%arg0: i32) -> i32 {
    %c0_i32 = arith.constant 0 : i32
    %c0_i32_0 = arith.constant 0 : i32
    return %c0_i32 : i32
  }
  func.func @transform_1(%arg0: i32) -> i32 {
    %c0_i32 = arith.constant 0 : i32
    %c0_i32_0 = arith.constant 0 : i32
    return %c0_i32 : i32
  }
  func.func @transform_2(%arg0: i32) -> (i32, i32, i32) {
    %c0_i32 = arith.constant 0 : i32
    %c0_i32_0 = arith.constant 0 : i32
    %c0_i32_1 = arith.constant 0 : i32
    return %arg0, %c0_i32, %c0_i32_0 : i32, i32, i32
  }
  func.func @transform_3(%arg0: i32) -> (i32, i32, i32) {
    %c0_i32 = arith.constant 0 : i32
    %c0_i32_0 = arith.constant 0 : i32
    %c0_i32_1 = arith.constant 0 : i32
    return %arg0, %c0_i32, %c0_i32_0 : i32, i32, i32
  }
}

</mosaic_0001>

<bundles_post_ra>
// kernel: tpu_custom_call.1
= control target key start
LH: loop header
LB: loop body
LE: loop exit
PB: predicated region body
PF: predicated region fallthrough
CT: control target
= control target key end

     0   :  { %s2730_s0 = inlined_call_operand.vmem [shape: f32[98], index: 0, kind: input, shape index: {}]   ;;  %s2731_s1 = inlined_call_operand.<no memory space> [shape: f32[1], index: 1, kind: input, shape index: {}]   ;;  %s2732_s2 = inlined_call_operand.hbm [shape: f32[2,4,256], index: 2, kind: input, shape index: {}]   ;;  %s2733_s3 = inlined_call_operand.hbm [shape: f32[2,4,256], index: 3, kind: output, shape index: {}]  }
   0x1   :  { %2751 = sst [smem:[#allocation20_spill]] %s2730_s0 }
   0x2   :  { %2752 = sst [smem:[#allocation21_spill]] %s2732_s2 }
   0x3   :  { %8 = sst [smem:[#allocation3]] %s2731_s1 }
   0x4   :  { %9 = vsyncpa [#allocation7], 0 }
   0x5   :  { %10 = vsyncpa [#allocation5], 0 }
   0x6   :  { %12 = vsyncpa [#allocation5 + $0x1], 0 }
   0x7   :  { %13 = vsyncpa [#allocation6], 0 }
   0x8   :  { %15 = vsyncpa [#allocation6 + $0x1], 0  ;;  %s1945_s14 = smov 0   ;;  %s1947_s15 = smov 0  }
   0x9   :  { %s1949_s16 = smov 0   ;;  %s1951_s17 = smov 0  }
   0xa LB: > { %2753 = sst [smem:[#allocation13_spill]] %s1898_s16  ;;  %s1966_s1 = sadd.s32 4294967295, %s1902_s17   ;;  %s1902_s17 = sphi %s1951_s17, %s2792_s17   ;;  %s1898_s16 = sphi %s1949_s16, %s2789_s16   ;;  %s1894_s15 = sphi %s1947_s15, %s2791_s15   ;;  %s1890_s14 = sphi %s1945_s14, %s2790_s14  }
   0xb   : > { %s1589_s18 = sadd.s32 4294967294, %s1902_s17   ;;  %p83_p0 = scmp.ne.s32.totalorder %s1894_s15, %s1890_s14 }
   0xc   : > { %p2734_p1 = scmp.eq.s32.totalorder %s1966_s1, 0  ;;  %p113_p3 = scmp.eq.s32.totalorder %s1589_s18, 1 }
   0xd   : > { %p1590_p5 = scmp.ge.s32.totalorder %s1902_s17, 1  ;;  %p120_p7 = scmp.lt.s32.totalorder %s1902_s17, 3 }
   0xe   : > { %p1975_p4 = por %p2734_p1, %p83_p0  ;;  %p1980_p6 = por %p113_p3, %p83_p0 }
   0xf   : > { %s2756_s0 = sld [smem:[#allocation20_spill]]  ;;  %p1988_p8 = pnand %p1590_p5, %p120_p7 }
  0x10   : > { %s2754_s19 = scalar_select %p1975_p4, 1, 0 }
  0x11   : > { %s2755_s20 = scalar_select %p1980_p6, 1, 0 }
  0x12   : > { %p1714_p10 = pneg %p1988_p8  ;;  %s1996_s25 = sadd.s32 1, %s1902_s17  }
  0x13   : > { %s67_s27 = ssub.s32 %s1902_s17, %s1996_s25  ;;  %s70_s29 = sadd.s32 1, %s1898_s16 }
  0x14   : > { %p2000_p11 = pnand %p1714_p10, %p2734_p1  ;;  %p2006_p12 = scmp.eq.s32.totalorder %s67_s27, 0 }
  0x15   : > { %s133_s23 = sshll.u32 %s2756_s0, 4  ;;  %p77_p13 = scmp.ne.s32.totalorder %s1898_s16, %s1894_s15  ;;  %s134_s23 = int_to_ptr.vmem [resolvable:$true] %s133_s23 }
  0x16   : > { %s1787_s30 = scalar_lea.vmem %s134_s23, 16  ;;  %p1789_p3 = pneg %p2000_p11 }
  0x17   : > { %p1788_p0 = scmp.ne.s32.totalorder %s134_s23, %s1787_s30  ;;  %p1795_p9 = scmp.lt.s32.totalorder %s134_s23, %s134_s23 }
  0x18   : > { %p1796_p2 = scmp.lt.s32.totalorder %s1787_s30, %s1787_s30 }
  0x19   : > { %p1790_p5 = pnand %p1789_p3, %p1788_p0 }
  0x1a   : > { %p1797_p10 = por %p1796_p2, %p1795_p9 }
  0x1b   : > { %p1791_p7 = pneg %p1790_p5 }
  0x1d   : > { %p1798_p1 = pnand %p1797_p10, %p1791_p7 }
  0x1f   : > { %1801 = shalt.err (!%p1798_p1)
}
  0x20   : > { %s1904_s4 = smov [#allocation4]   ;;  %p78_p2 = scmp.eq.s32.totalorder %s1902_s17, 0 }
  0x21   : > { %1717 = dma.vmem_to_smem (!%p2000_p11), %s134_s23, 16, %s1904_s4, [#allocation7]  }
  0x22   : > { %s2020_s5 = scalar_select %p2006_p12, %s1898_s16, %s70_s29  }
  0x23   : > { %p2761_p1 = scmp.eq.s32.totalorder %s1966_s1, 1  ;;  %p1727_p0 = scmp.lt.s32.totalorder %s1902_s17, 2 }
  0x24   : > { %2760 = sst [smem:[#allocation14_spill]] %s2020_s5  ;;  %s147_s7 = sand.u32 1, %s1898_s16  }
  0x25   : > { %p2028_p9 = por %p2761_p1, %p77_p13  ;;  %p79_p3 = por %p78_p2, %p77_p13 }
  0x26   : > { %s1593_s8 = sshll.u32 %s147_s7, 3  ;;  %s1704_s9 = sshll.u32 %s1902_s17, 7 }
  0x27   : > { %s2762_s6 = scalar_select %p2028_p9, 1, 0 }
  0x28   : > { %s2763_s2 = sld [smem:[#allocation21_spill]]  ;;  %s151_s13 = scalar_lea.vmem [#allocation8], %s1593_s8 }
  0x29   : > { %s159_s18 = sshll.u32 %s151_s13, 4  ;;  %p2043_p11 = pnand %p1727_p0, %p79_p3  ;;  %s2047_s18 = int_to_ptr.vmem [resolvable:$true] %s159_s18 }
  0x2a   : > { %s148_s22 = scalar_lea.sflag [#allocation5], %s147_s7 }
  0x2b   : > { %p1804_p13 = pneg %p2043_p11 }
  0x2e   : > { %s2041_s12 = scalar_lea.hbm %s2763_s2, %s1704_s9  ;;  %s1807_s28 = scalar_lea.hbm %s2763_s2, 256 }
  0x2f   : > { %s1802_s23 = scalar_lea.hbm %s2041_s12, 128  ;;  %p1808_p10 = scmp.lt.u32.totalorder %s2041_s12, %s2763_s2 }
  0x30   : > { %p1803_p12 = scmp.ne.s32.totalorder %s2041_s12, %s1802_s23  ;;  %p1809_p2 = scmp.lt.u32.totalorder %s1807_s28, %s1802_s23 }
  0x31   : > { %p1811_p0 = scmp.lt.u32.totalorder %s1802_s23, %s2041_s12 }
  0x32   : > { %p1805_p5 = pnand %p1804_p13, %p1803_p12  ;;  %p1810_p1 = por %p1809_p2, %p1808_p10 }
  0x34   : > { %p1806_p7 = pneg %p1805_p5  ;;  %p1812_p3 = por %p1811_p0, %p1810_p1 }
  0x36   : > { %p1813_p6 = pnand %p1812_p3, %p1806_p7 }
  0x38   : > { %1816 = shalt.err (!%p1813_p6)
}
  0x39   : > { %s1817_s4 = scalar_lea.vmem %s2047_s18, 128  ;;  %s1905_s7 = smov [#allocation8]  }
  0x3a   : > { %p1818_p12 = scmp.ne.s32.totalorder %s2047_s18, %s1817_s4  ;;  %s1822_s8 = sshll.u32 %s1905_s7, 4  ;;  %s1823_s8 = int_to_ptr.vmem [resolvable:$false] %s1822_s8 }
  0x3b   : > { %s1824_s9 = scalar_lea.vmem %s1823_s8, 256  ;;  %p1825_p4 = scmp.lt.s32.totalorder %s2047_s18, %s1823_s8 }
  0x3c   : > { %p1820_p5 = pnand %p1818_p12, %p1804_p13  ;;  %p1826_p10 = scmp.lt.s32.totalorder %s1824_s9, %s1817_s4 }
  0x3e   : > { %p1821_p9 = pneg %p1820_p5  ;;  %p1827_p2 = por %p1826_p10, %p1825_p4 }
  0x40   : > { %p1828_p1 = pnand %p1827_p2, %p1821_p9 }
  0x42   : > { %1831 = shalt.err (!%p1828_p1)
}
  0x43   : > { %1721 = dma.hbm_to_vmem [thread:$0]  (!%p2043_p11), %s2041_s12, 128, %s2047_s18, %s148_s22  }
  0x44   : > { %168 = sbr.rel (%p1988_p8) target bundleno = 692 (0x2b4), region = 32 }
  0x4b   : > { %p2765_p6 = scmp.eq.s32.totalorder %s1966_s1, 0 }
  0x4d   : > { %1877 = dma.done.wait (%p2765_p6), [#allocation7], 16   ;;  %p2766_p13 = pmov %p2765_p6 }
  0x4e   : > { %s2081_s10 = sand.u32 1, %s1894_s15   ;;  %p2767_p4 = scmp.ne.s32.totalorder %s2754_s19, 0 }
  0x4f   : > { %1879 = vsyncadd (%p2766_p13), [#allocation7], 4294967280  ;;  %s2737_s11 = sshll.u32 %s2081_s10, 3  ;;  %s175_s13 = scalar_lea.sflag [#allocation5], %s2081_s10 }
  0x50   : > { %s2087_s12 = scalar_lea.vmem [#allocation8], %s2737_s11 }
  0x51   : > { %1881 = dma.done.wait (%p2767_p4), %s175_s13, 128  }
  0x52   : > { %1883 = vsyncadd (%p2767_p4), %s175_s13, 4294967168 }
  0x53   : > { %183 = sfence }
  0x54   : > { %v202_v0 = vld [vmem:[%s2087_s12] sm:$0xff]  ;;  %vm206_vm0 = vcmask 1043456   ;;  %v2745_v1 = vlaneseq  ;;  %v1906_v9 = vmov 0.0   ;;  %v1907_v17 = vmov 1966171168   ;;  %s1908_s19 = smov 51  }
  0x55   : > { %v204_v2 = vcombine.high %v202_v0, %v202_v0  ;;  %v223_v3 = vsel %vm206_vm0, %v202_v0, -inf  ;;  %v207_v4 = vsel %vm206_vm0, %v202_v0, 0.0  ;;  %v254_v18 = vunpack.c.l.s4 %v1907_v17  ;;  %s1602_s24 = sld [smem:[#allocation4 + $0x38]]  ;;  %s1630_s18 = sld [smem:[#allocation4 + $0x3a]] }
  0x56   : > { %v224_v5 = vrot.slane %v223_v3, 4  ;;  %v208_v6 = vrot.slane %v207_v4, 4  ;;  %vm241_vm1 = vcmp.lt.s32.totalorder %v2745_v1, 51  ;;  %vm2096_vm2 = vcmp.ge.s32.totalorder %v2745_v1, 51  ;;  %s1604_s21 = sld [smem:[#allocation4 + $0x3f]]  ;;  %s1618_s22 = sld [smem:[#allocation4 + $0x40]] }
  0x57   : > { %v230_v7 = vsel %vm206_vm0, %v204_v2, -inf  ;;  %v214_v8 = vsel %vm206_vm0, %v204_v2, 0.0  ;;  %244 = vst.msk [vmem:[#allocation2 + $0x3] sm:$0x1] %vm241_vm1, %v1906_v9  ;;  %243 = vst.msk [vmem:[#allocation2] sm:$0x1] %vm241_vm1, %v1906_v9  ;;  %v255_v27 = vunpack.c.0.s8 %v254_v18 }
  0x58   : > { %v225_v11 = vmax.f32 %v223_v3, %v224_v5  ;;  %v231_v12 = vrot.slane %v230_v7, 4  ;;  %v209_v13 = vadd.f32 %v208_v6, %v207_v4  ;;  %v215_v14 = vrot.slane %v214_v8, 4  ;;  %s1606_s23 = sld [smem:[#allocation4 + $0x46]]  ;;  %s1658_s26 = sld [smem:[#allocation4 + $0x3c]] }
  0x59   : > { %vm246_vm3 = vcmp.lt.s32.totalorder %v2745_v1, 102  ;;  %v2104_v28 = vshrl.u32 %v2745_v1, 7  ;;  %vm273_vm5 = vcmp.lt.s32.totalorder %v2745_v1, 307  ;;  %vm270_vm6 = vcmask 416768   ;;  %s2114_s27 = sld [smem:[#allocation4 + $0x39]]  ;;  %s2116_s28 = sld [smem:[#allocation4 + $0x3d]] }
  0x5a   : > { %v226_v15 = vrot.slane %v225_v11, 2  ;;  %v232_v16 = vmax.f32 %v230_v7, %v231_v12  ;;  %vm247_vm4 = vmand %vm2096_vm2, %vm246_vm3  ;;  %v210_v19 = vrot.slane %v209_v13, 2  ;;  %v216_v20 = vadd.f32 %v215_v14, %v214_v8  ;;  %s2742_s29 = smov 112   ;;  %s2122_s30 = sld [smem:[#allocation4 + $0x3b]] }
  0x5b   : > { %249 = vst.msk [vmem:[#allocation2 + $0x5] sm:$0x1] %vm247_vm4, %v1906_v9  ;;  %248 = vst.msk [vmem:[#allocation2 + $0x2] sm:$0x1] %vm247_vm4, %v1906_v9  ;;  %v258_v36 = vsub.s32 %v255_v27, %v2104_v28  ;;  %v354_v52 = vstv %s1602_s24  ;;  %v674_v53 = vstv %s1630_s18  ;;  %s2124_s4 = sld [smem:[#allocation4 + $0x42]]  ;;  %s2126_s7 = sld [smem:[#allocation4 + $0x41]] }
  0x5c   : > { %v227_v21 = vmax.f32 %v225_v11, %v226_v15  ;;  %v233_v22 = vrot.slane %v232_v16, 2  ;;  %v211_v23 = vadd.f32 %v210_v19, %v209_v13  ;;  %v217_v24 = vrot.slane %v216_v20, 2  ;;  %vm274_vm7 = vmand %vm2096_vm2, %vm273_vm5  ;;  %s2738_s8 = smov 96   ;;  %s2130_s9 = sld [smem:[#allocation4 + $0x48]] }
  0x5d   : > { %v375_v57 = vstv %s1604_s21  ;;  %v530_v58 = vstv %s1618_s22  ;;  %s2132_s13 = sld [smem:[#allocation4 + $0x47]]  ;;  %s2138_s24 = sld [smem:[#allocation4 + $0x43]]  ;;  %vm348_vm8 = vcmask 916480   ;;  %vm370_vm9 = vcmask 785408  }
  0x5e   : > { %v228_v25 = vrot.slane %v227_v21, 1  ;;  %v234_v26 = vmax.f32 %v232_v16, %v233_v22  ;;  %v212_v29 = vrot.slane %v211_v23, 1  ;;  %v218_v30 = vadd.f32 %v217_v24, %v216_v20  ;;  %s2140_s18 = sld [smem:[#allocation4 + $0x49]]  ;;  %s2144_s21 = sld [smem:[#allocation4 + $0x32]] }
  0x5f   : > { %v396_v61 = vstv %s1606_s23  ;;  %v992_v62 = vstv %s1658_s26  ;;  %v510_v2 = vstv %s2114_s27  ;;  %v1156_v3 = vstv %s2116_s28  ;;  %s2146_s22 = sld [smem:[#allocation4 + $0x33]]  ;;  %s2740_s23 = smov 80  }
  0x60   : > { %v229_v31 = vmax.f32 %v227_v21, %v228_v25  ;;  %v235_v32 = vrot.slane %v234_v26, 1  ;;  %v213_v33 = vadd.f32 %v212_v29, %v211_v23  ;;  %v219_v34 = vrot.slane %v218_v30, 1  ;;  %s2150_s26 = sld [smem:[#allocation4 + $0x34]]  ;;  %s2152_s11 = sld [smem:[#allocation4 + $0x35]] }
  0x61   : > { %s2156_s0 = sld [smem:[#allocation4 + $0x36]]  ;;  %s2160_s27 = sld [smem:[#allocation4 + $0x2]]  ;;  %v838_v6 = vstv %s2122_s30  ;;  %v858_v7 = vstv %s2124_s4  ;;  %v694_v10 = vstv %s2126_s7  ;;  %vm391_vm10 = vcmask 654336  }
  0x62   : > { %v236_v35 = vmax.f32 %v234_v26, %v235_v32  ;;  %v220_v37 = vadd.f32 %v219_v34, %v218_v30  ;;  %v237_v38 = vmul.f32 0.25, %v213_v33  ;;  %s2162_s28 = sld [smem:[#allocation4 + $0x37]]  ;;  %s2770_s2 = smov 112   ;;  %v714_v11 = vstv %s2130_s9 }
  0x63   : > { %s2172_s5 = sld [smem:[#allocation4 + $0x5]]  ;;  %s2174_s16 = sld [smem:[#allocation4 + $0x6]]  ;;  %v550_v12 = vstv %s2132_s13  ;;  %v1012_v14 = vstv %s2138_s24  ;;  %vm412_vm11 = vcmask 523264   ;;  %vm433_vm12 = vcmask 392192  }
  0x64   : > { %v278_v39 = vcombine.low %v229_v31, %v236_v35  ;;  %v238_v40 = vmul.f32 0.25, %v220_v37  ;;  %s2771_s30 = smov 96   ;;  %v878_v15 = vstv %s2140_s18  ;;  %v496_v16 = vstv %s2144_s21  ;;  %s2196_s4 = sld [smem:[#allocation4 + $0x3e]] }
  0x65   : > { %v660_v17 = vstv %s2146_s22  ;;  %s2198_s7 = sld [smem:[#allocation4 + $0x4f]]  ;;  %s2772_s9 = smov 80   ;;  %vm454_vm13 = vcmask 261120   ;;  %vm646_vm14 = vcmask 1039360   ;;  %vm810_vm3 = vcmask 1031168  }
  0x66   : > { %v285_v41 = vrot.slane %v278_v39, %v258_v36  ;;  %v252_v42 = vcombine.low %v237_v38, %v238_v40  ;;  %v824_v18 = vstv %s2150_s26  ;;  %v978_v19 = vstv %s2152_s11  ;;  %s1650_s11 = sld [smem:[#allocation4 + $0x50]]  ;;  %s1912_s13 = smov 64  }
  0x67   : > { %v656_v24 = vstv %s2160_s27  ;;  %v1142_v27 = vstv %s2156_s0  ;;  %s2216_s0 = sld [smem:[#allocation4 + $0x4e]]  ;;  %s1678_s24 = sld [smem:[#allocation4 + $0x52]] }
  0x68   : > { %v292_v43 = vrot.slane %v285_v41, %v258_v36  ;;  %v259_v44 = vrot.slane %v252_v42, %v258_v36  ;;  %v1306_v29 = vstv %s2162_s28  ;;  %s1664_s18 = sld [smem:[#allocation4 + $0x51]]  ;;  %s1652_s21 = sld [smem:[#allocation4 + $0x57]] }
  0x69   : > { %v1138_v30 = vstv %s2172_s5  ;;  %v1302_v31 = vstv %s2174_s16  ;;  %s2218_s5 = sld [smem:[#allocation4 + $0x4b]]  ;;  %s1662_s16 = sld [smem:[#allocation4 + $0x4a]] }
  0x6a   : > { %293 = vrot.lane.b32.xlu0 %v292_v43, %s1908_s19  ;;  %v266_v45 = vrot.slane %v259_v44, %v258_v36  ;;  %s1690_s22 = sld [smem:[#allocation4 + $0x4c]]  ;;  %s1913_s26 = smov 48  }
  0x6b   : > { %s1626_s27 = sld [smem:[#allocation4 + $0x5c]]  ;;  %s1692_s28 = sld [smem:[#allocation4 + $0x53]] }
  0x6c   : > { %p2785_p9 = scmp.ne.s32.totalorder %s2762_s6, 0 }
  0x6e   : > { %267 = vrot.lane.b32.xlu0 %v266_v45, %s1908_s19  ;;  %s2134_s19 = sld [smem:[#allocation4 + $0x44]] }
  0x74   : > { %v1176_v13 = vstv %s2134_s19  ;;  %s1624_s19 = sld [smem:[#allocation4 + $0x55]] }
  0xdc   : > { %v294_v46 = vpop.permute.xlu0 %293 }
  0xdd   : > { %v295_v47 = vrot.slane %v294_v46, 7 }
  0xdf   : > { %v296_v48 = vsel %vm270_vm6, %v295_v47, %v294_v46 }
  0xe0   : > { %299 = vst.msk [vmem:[#allocation2 + $0x3] sm:$0x7] %vm274_vm7, %v296_v48  ;;  %v268_v49 = vpop.permute.xlu0 %267 }
  0xe1   : > { %v269_v50 = vrot.slane %v268_v49, 7 }
  0xe3   : > { %v271_v51 = vsel %vm270_vm6, %v269_v50, %v268_v49  ;;  %vm966_vm6 = vcmask 1022976  }
  0xe4   : > { %275 = vst.msk [vmem:[#allocation2] sm:$0x7] %vm274_vm7, %v271_v51  ;;  %vm1128_vm7 = vcmask 1014784  }
  0xe7   : > { %v2110_v54 = vld [vmem:[#allocation2 + $0x3] sm:$0x7] }
  0xe8   : > { %v355_v55 = vmul.f32 %v354_v52, %v2110_v54  ;;  %v675_v56 = vmul.f32 %v674_v53, %v2110_v54  ;;  %v376_v59 = vmul.f32 %v375_v57, %v2110_v54  ;;  %v531_v60 = vmul.f32 %v530_v58, %v2110_v54 }
  0xe9   : > { %v397_v63 = vmul.f32 %v396_v61, %v2110_v54  ;;  %v993_v0 = vmul.f32 %v992_v62, %v2110_v54  ;;  %v511_v4 = vmul.f32 %v510_v2, %v2110_v54  ;;  %v1157_v5 = vmul.f32 %v1156_v3, %v2110_v54 }
  0xea   : > { %357 = vrot.lane.b32.xlu1 %v355_v55, %s2742_s29  ;;  %677 = vrot.lane.b32.xlu0 %v675_v56, %s2742_s29  ;;  %v839_v8 = vmul.f32 %v838_v6, %v2110_v54  ;;  %v859_v9 = vmul.f32 %v858_v7, %v2110_v54  ;;  %v695_v21 = vmul.f32 %v694_v10, %v2110_v54  ;;  %v1320_v53 = vstv %s2196_s4  ;;  %s1640_s4 = sld [smem:[#allocation4 + $0x5d]] }
  0xeb   : > { %v2190_v20 = vld [vmem:[#allocation2] sm:$0x7]  ;;  %v715_v22 = vmul.f32 %v714_v11, %v2110_v54  ;;  %v551_v32 = vmul.f32 %v550_v12, %v2110_v54  ;;  %v497_v34 = vmul.f32 %v496_v16, %v2110_v54  ;;  %v1177_v36 = vmul.f32 %v1176_v13, %v2110_v54 }
  0xec   : > { %v657_v35 = vmul.f32 %v656_v24, %v2190_v20  ;;  %v661_v37 = vmul.f32 %v660_v17, %v2110_v54  ;;  %v825_v39 = vmul.f32 %v824_v18, %v2110_v54  ;;  %v979_v42 = vmul.f32 %v978_v19, %v2110_v54 }
  0xed   : > { %v1139_v43 = vmul.f32 %v1138_v30, %v2190_v20  ;;  %v1143_v46 = vmul.f32 %v1142_v27, %v2110_v54  ;;  %v1303_v48 = vmul.f32 %v1302_v31, %v2190_v20  ;;  %v1307_v49 = vmul.f32 %v1306_v29, %v2110_v54 }
  0xee   : > { %378 = vrot.lane.b32.xlu1 %v376_v59, %s2738_s8  ;;  %533 = vrot.lane.b32.xlu0 %v531_v60, %s2738_s8  ;;  %s2154_s8 = sld [smem:[#allocation4 + $0x1]]  ;;  %v2227_v44 = vadd.f32 %v661_v37, %v657_v35  ;;  %v1013_v50 = vmul.f32 %v1012_v14, %v2110_v54  ;;  %v879_v51 = vmul.f32 %v878_v15, %v2110_v54  ;;  %v734_v55 = vstv %s2198_s7  ;;  %s1668_s7 = sld [smem:[#allocation4 + $0x5f]] }
  0xef   : > { %v2238_v52 = vadd.f32 %v1143_v46, %v1139_v43  ;;  %v2242_v56 = vadd.f32 %v1307_v49, %v1303_v48  ;;  %v1321_v57 = vmul.f32 %v1320_v53, %v2110_v54  ;;  %v735_v58 = vmul.f32 %v734_v55, %v2110_v54 }
  0xf0   : > { %v570_v59 = vstv %s2216_s0  ;;  %v1196_v60 = vstv %s2218_s5  ;;  %v1052_v12 = vstv %s1664_s18  ;;  %v918_v13 = vstv %s1652_s21  ;;  %s1680_s0 = sld [smem:[#allocation4 + $0x59]]  ;;  %s1694_s5 = sld [smem:[#allocation4 + $0x5a]] }
  0xf1   : > { %v571_v61 = vmul.f32 %v570_v59, %v2110_v54  ;;  %v1197_v62 = vmul.f32 %v1196_v60, %v2110_v54  ;;  %v1053_v14 = vmul.f32 %v1052_v12, %v2110_v54  ;;  %v919_v15 = vmul.f32 %v918_v13, %v2110_v54  ;;  %s1601_s18 = sld [smem:[#allocation4 + $0x7]]  ;;  %s1629_s21 = sld [smem:[#allocation4 + $0x9]] }
  0xf2   : > { %399 = vrot.lane.b32.xlu1 %v397_v63, %s2740_s23  ;;  %995 = vrot.lane.b32.xlu0 %v993_v0, %s2742_s29  ;;  %s2166_s23 = sld [smem:[#allocation4 + $0x3]]  ;;  %s2168_s29 = sld [smem:[#allocation4 + $0x4]]  ;;  %v1032_v63 = vstv %s1662_s16  ;;  %v898_v0 = vstv %s1650_s11 }
  0xf3   : > { %v1033_v2 = vmul.f32 %v1032_v63, %v2110_v54  ;;  %v899_v3 = vmul.f32 %v898_v0, %v2110_v54  ;;  %v1360_v16 = vstv %s1690_s22  ;;  %s1603_s16 = sld [smem:[#allocation4 + $0xe]]  ;;  %s1617_s22 = sld [smem:[#allocation4 + $0xf]] }
  0xf4   : > { %v492_v23 = vstv %s2154_s8  ;;  %s1638_s8 = sld [smem:[#allocation4 + $0x56]]  ;;  %v1361_v18 = vmul.f32 %v1360_v16, %v2110_v54 }
  0xf5   : > { %v493_v33 = vmul.f32 %v492_v23, %v2190_v20  ;;  %s1654_s11 = sld [smem:[#allocation4 + $0x5e]] }
  0xf6   : > { %513 = vrot.lane.b32.xlu1 %v511_v4, %s2770_s2  ;;  %1159 = vrot.lane.b32.xlu0 %v1157_v5, %s2770_s2  ;;  %v1236_v30 = vstv %s1680_s0  ;;  %v1400_v31 = vstv %s1694_s5  ;;  %s1671_s0 = sld [smem:[#allocation4 + $0xc]]  ;;  %s1633_s5 = sld [smem:[#allocation4 + $0x17]] }
  0xf7   : > { %v2220_v40 = vadd.f32 %v497_v34, %v493_v33  ;;  %v1237_v33 = vmul.f32 %v1236_v30, %v2110_v54  ;;  %v1401_v34 = vmul.f32 %v1400_v31, %v2110_v54  ;;  %v342_v46 = vstv %s1601_s18  ;;  %s1635_s18 = sld [smem:[#allocation4 + $0x1e]] }
  0xf8   : > { %v820_v25 = vstv %s2166_s23  ;;  %v974_v26 = vstv %s2168_s29  ;;  %s1688_s29 = sld [smem:[#allocation4 + $0x45]]  ;;  %s1666_s23 = sld [smem:[#allocation4 + $0x58]]  ;;  %v343_v49 = vmul.f32 %v342_v46, %v2190_v20 }
  0xf9   : > { %v821_v38 = vmul.f32 %v820_v25, %v2190_v20  ;;  %v975_v41 = vmul.f32 %v974_v26, %v2190_v20  ;;  %v774_v25 = vstv %s1640_s4  ;;  %v1092_v26 = vstv %s1668_s7  ;;  %s1631_s4 = sld [smem:[#allocation4 + $0x10]]  ;;  %s1645_s7 = sld [smem:[#allocation4 + $0x11]] }
  0xfa   : > { %841 = vrot.lane.b32.xlu1 %v839_v8, %s2770_s2  ;;  %861 = vrot.lane.b32.xlu0 %v859_v9, %s2771_s30  ;;  %v754_v5 = vstv %s1638_s8  ;;  %v590_v8 = vstv %s1624_s19  ;;  %v775_v27 = vmul.f32 %v774_v25, %v2110_v54  ;;  %v1093_v29 = vmul.f32 %v1092_v26, %v2110_v54  ;;  %s1682_s8 = sld [smem:[#allocation4 + $0x60]]  ;;  %s1605_s19 = sld [smem:[#allocation4 + $0x15]] }
  0xfb   : > { %v2229_v45 = vadd.f32 %v825_v39, %v821_v38  ;;  %v2232_v47 = vadd.f32 %v979_v42, %v975_v41  ;;  %v755_v7 = vmul.f32 %v754_v5, %v2110_v54  ;;  %v1216_v9 = vstv %s1678_s24  ;;  %s1615_s24 = sld [smem:[#allocation4 + $0x8]] }
  0xfc   : > { %v591_v10 = vmul.f32 %v590_v8, %v2110_v54  ;;  %v1217_v11 = vmul.f32 %v1216_v9, %v2110_v54  ;;  %v938_v35 = vstv %s1654_s11  ;;  %s1673_s11 = sld [smem:[#allocation4 + $0x13]] }
  0xfd   : > { %v939_v37 = vmul.f32 %v938_v35, %v2110_v54 }
  0xfe   : > { %697 = vrot.lane.b32.xlu1 %v695_v21, %s2771_s30  ;;  %717 = vrot.lane.b32.xlu0 %v715_v22, %s2772_s9  ;;  %v1340_v4 = vstv %s1688_s29  ;;  %v1072_v17 = vstv %s1666_s23  ;;  %s1914_s29 = smov 32   ;;  %s1657_s23 = sld [smem:[#allocation4 + $0xb]] }
  0xff   : > { %v1341_v6 = vmul.f32 %v1340_v4, %v2110_v54  ;;  %v1073_v19 = vmul.f32 %v1072_v17, %v2110_v54  ;;  %v610_v21 = vstv %s1626_s27  ;;  %v1380_v22 = vstv %s1692_s28  ;;  %s1643_s27 = sld [smem:[#allocation4 + $0xa]]  ;;  %s1619_s28 = sld [smem:[#allocation4 + $0x16]] }
 0x100   : > { %v611_v23 = vmul.f32 %v610_v21, %v2110_v54  ;;  %v1381_v24 = vmul.f32 %v1380_v22, %v2110_v54  ;;  %v1256_v38 = vstv %s1682_s8  ;;  %v385_v39 = vstv %s1605_s19  ;;  %s1685_s8 = sld [smem:[#allocation4 + $0xd]]  ;;  %s1647_s19 = sld [smem:[#allocation4 + $0x18]] }
 0x101   : > { %v1257_v41 = vmul.f32 %v1256_v38, %v2110_v54  ;;  %v386_v42 = vmul.f32 %v385_v39, %v2190_v20  ;;  %v500_v43 = vstv %s1615_s24  ;;  %s1621_s24 = sld [smem:[#allocation4 + $0x1d]] }
 0x102   : > { %553 = vrot.lane.b32.xlu1 %v551_v32, %s2772_s9  ;;  %1179 = vrot.lane.b32.xlu0 %v1177_v36, %s2771_s30  ;;  %v364_v32 = vstv %s1603_s16  ;;  %v501_v48 = vmul.f32 %v500_v43, %v2190_v20  ;;  %s1659_s16 = sld [smem:[#allocation4 + $0x12]] }
 0x103   : > { %v365_v36 = vmul.f32 %v364_v32, %v2190_v20 }
 0x106   : > { %1015 = vrot.lane.b32.xlu1 %v1013_v50, %s2771_s30  ;;  %881 = vrot.lane.b32.xlu0 %v879_v51, %s2772_s9  ;;  %v664_v50 = vstv %s1629_s21  ;;  %v520_v51 = vstv %s1617_s22  ;;  %s1661_s21 = sld [smem:[#allocation4 + $0x19]]  ;;  %s1675_s22 = sld [smem:[#allocation4 + $0x1a]] }
 0x107   : > { %v665_v53 = vmul.f32 %v664_v50, %v2190_v20  ;;  %v521_v55 = vmul.f32 %v520_v51, %v2190_v20 }
 0x10a   : > { %1323 = vrot.lane.b32.xlu1 %v1321_v57, %s2770_s2  ;;  %737 = vrot.lane.b32.xlu0 %v735_v58, %s1912_s13  ;;  %v982_v57 = vstv %s1657_s23  ;;  %v828_v58 = vstv %s1643_s27  ;;  %s1687_s23 = sld [smem:[#allocation4 + $0x14]]  ;;  %s1649_s27 = sld [smem:[#allocation4 + $0x1f]] }
 0x10b   : > { %v983_v59 = vmul.f32 %v982_v57, %v2190_v20  ;;  %v829_v60 = vmul.f32 %v828_v58, %v2190_v20 }
 0x10e   : > { %573 = vrot.lane.b32.xlu1 %v571_v61, %s1912_s13  ;;  %1199 = vrot.lane.b32.xlu0 %v1197_v62, %s2772_s9  ;;  %v540_v61 = vstv %s1619_s28  ;;  %v684_v62 = vstv %s1631_s4  ;;  %s1623_s28 = sld [smem:[#allocation4 + $0x24]]  ;;  %s1637_s4 = sld [smem:[#allocation4 + $0x25]] }
 0x10f   : > { %v541_v63 = vmul.f32 %v540_v61, %v2190_v20  ;;  %v685_v0 = vmul.f32 %v684_v62, %v2190_v20 }
 0x110   : > { %v888_v30 = vstv %s1649_s27  ;;  %s1609_s27 = sld [smem:[#allocation4 + $0x23]] }
 0x112   : > { %1035 = vrot.lane.b32.xlu1 %v1033_v2, %s2772_s9  ;;  %901 = vrot.lane.b32.xlu0 %v899_v3, %s1912_s13  ;;  %v848_v2 = vstv %s1645_s7  ;;  %v1146_v3 = vstv %s1671_s0  ;;  %s1677_s7 = sld [smem:[#allocation4 + $0x21]]  ;;  %s1689_s0 = sld [smem:[#allocation4 + $0x1b]] }
 0x113   : > { %v849_v4 = vmul.f32 %v848_v2, %v2190_v20  ;;  %v1147_v5 = vmul.f32 %v1146_v3, %v2190_v20 }
 0x114   : > { %v580_v31 = vstv %s1623_s28  ;;  %s1696_s28 = sld [smem:[#allocation4 + $0x61]] }
 0x115   : > { %v581_v35 = vmul.f32 %v580_v31, %v2190_v20 }
 0x116   : > { %1343 = vrot.lane.b32.xlu1 %v1341_v6, %s2771_s30  ;;  %757 = vrot.lane.b32.xlu0 %v755_v7, %s1913_s26  ;;  %v704_v6 = vstv %s1633_s5  ;;  %v1002_v7 = vstv %s1659_s16  ;;  %s1651_s5 = sld [smem:[#allocation4 + $0x26]]  ;;  %s1625_s16 = sld [smem:[#allocation4 + $0x2b]] }
 0x117   : > { %v705_v8 = vmul.f32 %v704_v6, %v2190_v20  ;;  %v1003_v9 = vmul.f32 %v1002_v7, %v2190_v20 }
 0x118   : > { %v1206_v43 = vstv %s1677_s7  ;;  %v1350_v46 = vstv %s1689_s0  ;;  %s1610_s7 = sld [smem:[#allocation4 + $0x54]]  ;;  %s1612_s0 = sld [smem:[#allocation4 + $0x5b]] }
 0x119   : > { %v1207_v50 = vmul.f32 %v1206_v43, %v2190_v20  ;;  %v1351_v51 = vmul.f32 %v1350_v46, %v2190_v20 }
 0x11a   : > { %593 = vrot.lane.b32.xlu1 %v591_v10, %s1913_s26  ;;  %1219 = vrot.lane.b32.xlu0 %v1217_v11, %s1912_s13  ;;  %v1166_v10 = vstv %s1673_s11  ;;  %v1310_v11 = vstv %s1685_s8  ;;  %s1665_s11 = sld [smem:[#allocation4 + $0x27]]  ;;  %s1667_s8 = sld [smem:[#allocation4 + $0x2e]] }
 0x11b   : > { %v1167_v12 = vmul.f32 %v1166_v10, %v2190_v20  ;;  %v1311_v13 = vmul.f32 %v1310_v11, %v2190_v20 }
 0x11e   : > { %1055 = vrot.lane.b32.xlu1 %v1053_v14, %s1912_s13  ;;  %921 = vrot.lane.b32.xlu0 %v919_v15, %s1913_s26  ;;  %v868_v14 = vstv %s1647_s19  ;;  %v560_v15 = vstv %s1621_s24  ;;  %s1691_s19 = sld [smem:[#allocation4 + $0x22]]  ;;  %s1693_s24 = sld [smem:[#allocation4 + $0x29]] }
 0x11f   : > { %v869_v16 = vmul.f32 %v868_v14, %v2190_v20  ;;  %v561_v17 = vmul.f32 %v560_v15, %v2190_v20 }
 0x120   : > { %v1062_v62 = vstv %s1665_s11  ;;  %s1919_s11 = smov 123  }
 0x121   : > { %v1063_v3 = vmul.f32 %v1062_v62, %v2190_v20 }
 0x122   : > { %1363 = vrot.lane.b32.xlu1 %v1361_v18, %s2772_s9  ;;  %1075 = vrot.lane.b32.xlu0 %v1073_v19, %s1913_s26  ;;  %v724_v18 = vstv %s1635_s18  ;;  %v1022_v19 = vstv %s1661_s21  ;;  %s1679_s18 = sld [smem:[#allocation4 + $0x28]]  ;;  %s1653_s21 = sld [smem:[#allocation4 + $0x2d]] }
 0x123   : > { %v725_v21 = vmul.f32 %v724_v18, %v2190_v20  ;;  %v1023_v22 = vmul.f32 %v1022_v19, %v2190_v20 }
 0x124   : > { %v1390_v10 = vstv %s1693_s24  ;;  %s1705_s24 = sshll.u32 %s1966_s1, 7  ;;  %s1921_s1 = smov [#allocation9]  }
 0x125   : > { %v1391_v14 = vmul.f32 %v1390_v10, %v2190_v20 }
 0x126   : > { %613 = vrot.lane.b32.xlu1 %v611_v23, %s1914_s29  ;;  %1383 = vrot.lane.b32.xlu0 %v1381_v24, %s1912_s13  ;;  %v1186_v23 = vstv %s1675_s22  ;;  %v1330_v24 = vstv %s1687_s23  ;;  %s1607_s22 = sld [smem:[#allocation4 + $0x1c]]  ;;  %s1681_s23 = sld [smem:[#allocation4 + $0x2f]] }
 0x128   : > { %v1226_v11 = vstv %s1679_s18  ;;  %s2784_s18 = sshll.u32 %s2081_s10, 3 }
 0x129   : > { %v1227_v15 = vmul.f32 %v1226_v11, %v2190_v20 }
 0x12a   : > { %777 = vrot.lane.b32.xlu1 %v775_v27, %s1914_s29  ;;  %1095 = vrot.lane.b32.xlu0 %v1093_v29, %s1914_s29  ;;  %v1187_v27 = vmul.f32 %v1186_v23, %v2190_v20  ;;  %v1331_v29 = vmul.f32 %v1330_v24, %v2190_v20 }
 0x12c   : > { %v406_v23 = vstv %s1607_s22  ;;  %v1246_v24 = vstv %s1681_s23 }
 0x12d   : > { %v1247_v31 = vmul.f32 %v1246_v24, %v2190_v20 }
 0x12e   : > { %1239 = vrot.lane.b32.xlu1 %v1237_v33, %s1913_s26  ;;  %1403 = vrot.lane.b32.xlu0 %v1401_v34, %s1913_s26  ;;  %v889_v34 = vmul.f32 %v888_v30, %v2190_v20  ;;  %v407_v30 = vmul.f32 %v406_v23, %v2190_v20 }
 0x132   : > { %941 = vrot.lane.b32.xlu1 %v939_v37, %s1914_s29  ;;  %367 = vrot.lane.b32.xlu0 %v365_v36, %s2771_s30  ;;  %v744_v36 = vstv %s1637_s4  ;;  %s1611_s4 = sld [smem:[#allocation4 + $0x2a]] }
 0x136   : > { %1259 = vrot.lane.b32.xlu1 %v1257_v41, %s1914_s29  ;;  %388 = vrot.lane.b32.xlu0 %v386_v42, %s2772_s9  ;;  %v745_v41 = vmul.f32 %v744_v36, %v2190_v20 }
 0x138   : > { %v448_v43 = vstv %s1611_s4 }
 0x13a   : > { %503 = vrot.lane.b32.xlu0 %v501_v48, %s2770_s2  ;;  %345 = vrot.lane.b32.xlu1 %v343_v49, %s2770_s2 }
 0x13e   : > { %667 = vrot.lane.b32.xlu0 %v665_v53, %s2770_s2  ;;  %523 = vrot.lane.b32.xlu1 %v521_v55, %s2771_s30  ;;  %v908_v53 = vstv %s1651_s5  ;;  %v600_v55 = vstv %s1625_s16  ;;  %s1916_s5 = smov 126   ;;  %s1917_s16 = smov 125  }
 0x142   : > { %985 = vrot.lane.b32.xlu0 %v983_v59, %s2770_s2  ;;  %831 = vrot.lane.b32.xlu1 %v829_v60, %s2770_s2  ;;  %v909_v59 = vmul.f32 %v908_v53, %v2190_v20  ;;  %v601_v60 = vmul.f32 %v600_v55, %v2190_v20  ;;  %v449_v53 = vmul.f32 %v448_v43, %v2190_v20 }
 0x146   : > { %543 = vrot.lane.b32.xlu0 %v541_v63, %s2772_s9  ;;  %687 = vrot.lane.b32.xlu1 %v685_v0, %s2771_s30 }
 0x14a   : > { %851 = vrot.lane.b32.xlu0 %v849_v4, %s2771_s30  ;;  %1149 = vrot.lane.b32.xlu1 %v1147_v5, %s2770_s2  ;;  %v1082_v4 = vstv %s1667_s8  ;;  %v1370_v5 = vstv %s1691_s19  ;;  %s1920_s8 = smov 122   ;;  %s2663_s19 = sld [smem:[#allocation3]] }
 0x14e   : > { %707 = vrot.lane.b32.xlu0 %v705_v8, %s2772_s9  ;;  %1005 = vrot.lane.b32.xlu1 %v1003_v9, %s2771_s30  ;;  %v1083_v8 = vmul.f32 %v1082_v4, %v2190_v20  ;;  %v1371_v9 = vmul.f32 %v1370_v5, %v2190_v20 }
 0x152   : > { %1169 = vrot.lane.b32.xlu0 %v1167_v12, %s2771_s30  ;;  %1313 = vrot.lane.b32.xlu1 %v1311_v13, %s2770_s2  ;;  %s1663_s2 = sld [smem:[#allocation4 + $0x20]] }
 0x156   : > { %871 = vrot.lane.b32.xlu0 %v869_v16, %s2772_s9  ;;  %563 = vrot.lane.b32.xlu1 %v561_v17, %s1912_s13  ;;  %v928_v17 = vstv %s1653_s21 }
 0x158   : > { %v1042_v37 = vstv %s1663_s2  ;;  %s1608_s2 = sld [smem:[#allocation4 + $0x4d]] }
 0x159   : > { %v1043_v42 = vmul.f32 %v1042_v37, %v2190_v20 }
 0x15a   : > { %727 = vrot.lane.b32.xlu0 %v725_v21, %s1912_s13  ;;  %1025 = vrot.lane.b32.xlu1 %v1023_v22, %s2772_s9  ;;  %v929_v22 = vmul.f32 %v928_v17, %v2190_v20 }
 0x15c   : > { %v2332_v25 = vpop.permute.xlu1 %357  ;;  %v2334_v26 = vpop.permute.xlu0 %677 }
 0x15e   : > { %1189 = vrot.lane.b32.xlu0 %v1187_v27, %s2772_s9  ;;  %1333 = vrot.lane.b32.xlu1 %v1331_v29, %s2771_s30  ;;  %s1639_s30 = sld [smem:[#allocation4 + $0x2c]]  ;;  %v417_v46 = vstv %s1608_s2 }
 0x15f   : > { %v418_v55 = vmul.f32 %v417_v46, %v2110_v54 }
 0x160   : > { %v2340_v32 = vpop.permute.xlu1 %378  ;;  %v2342_v33 = vpop.permute.xlu0 %533 }
 0x162   : > { %891 = vrot.lane.b32.xlu0 %v889_v34, %s1912_s13  ;;  %583 = vrot.lane.b32.xlu1 %v581_v35, %s1913_s26  ;;  %v427_v34 = vstv %s1609_s27  ;;  %v1420_v35 = vstv %s1696_s28  ;;  %s2686_s27 = scalar_lea.hbm %s2733_s3, %s1705_s24  ;;  %s1493_s28 = scalar_lea.sflag [#allocation6], %s2081_s10 }
 0x164   : > { %v2348_v38 = vpop.permute.xlu1 %399  ;;  %v2350_v39 = vpop.permute.xlu0 %995  ;;  %v764_v61 = vstv %s1639_s30  ;;  %s1918_s30 = smov 124  }
 0x165   : > { %2773 = vst [vmem:[#allocation15_spill] sm:$0xff] %v2348_v38  ;;  %v765_v2 = vmul.f32 %v764_v61, %v2190_v20 }
 0x166   : > { %747 = vrot.lane.b32.xlu0 %v745_v41, %s1913_s26  ;;  %1045 = vrot.lane.b32.xlu1 %v1043_v42, %s1912_s13  ;;  %v428_v41 = vmul.f32 %v427_v34, %v2190_v20  ;;  %v1421_v42 = vmul.f32 %v1420_v35, %v2110_v54  ;;  %v359_v35 = vrot.slane %v2332_v25, 1 }
 0x168   : > { %v2356_v48 = vpop.permute.xlu1 %513  ;;  %v2358_v49 = vpop.permute.xlu0 %1159 }
 0x169   : > { %v515_v46 = vrot.slane %v2356_v48, 1 }
 0x16a   : > { %1209 = vrot.lane.b32.xlu0 %v1207_v50, %s1912_s13  ;;  %1353 = vrot.lane.b32.xlu1 %v1351_v51, %s2772_s9  ;;  %s1695_s9 = sld [smem:[#allocation4 + $0x30]] }
 0x16c   : > { %v2364_v57 = vpop.permute.xlu1 %841  ;;  %v2366_v58 = vpop.permute.xlu0 %861 }
 0x16e   : > { %911 = vrot.lane.b32.xlu0 %v909_v59, %s1913_s26  ;;  %603 = vrot.lane.b32.xlu1 %v601_v60, %s1914_s29  ;;  %v438_v59 = vstv %s1610_s7 }
 0x16f   : > { %v439_v62 = vmul.f32 %v438_v59, %v2110_v54 }
 0x170   : > { %v2372_v63 = vpop.permute.xlu1 %697  ;;  %v2374_v0 = vpop.permute.xlu0 %717  ;;  %v1410_v16 = vstv %s1695_s9  ;;  %s201_s9 = scalar_lea.vmem [#allocation9], %s2784_s18 }
 0x171   : > { %v1411_v21 = vmul.f32 %v1410_v16, %v2190_v20  ;;  %s1507_s21 = sshll.u32 %s201_s9, 4  ;;  %s2688_s21 = int_to_ptr.vmem [resolvable:$true] %s1507_s21 }
 0x172   : > { %767 = vrot.lane.b32.xlu0 %v765_v2, %s1914_s29  ;;  %1065 = vrot.lane.b32.xlu1 %v1063_v3, %s1913_s26  ;;  %v459_v2 = vstv %s1612_s0  ;;  %s1832_s4 = scalar_lea.vmem %s2688_s21, 128 }
 0x173   : > { %v460_v20 = vmul.f32 %v459_v2, %v2110_v54  ;;  %p1833_p8 = scmp.ne.s32.totalorder %s2688_s21, %s1832_s4 }
 0x174   : > { %v2380_v6 = vpop.permute.xlu1 %553  ;;  %v2382_v7 = vpop.permute.xlu0 %1179 }
 0x175   : > { %p1834_p11 = pnand %p1833_p8, %p2785_p9 }
 0x176   : > { %1085 = vrot.lane.b32.xlu0 %v1083_v8, %s1914_s29  ;;  %1373 = vrot.lane.b32.xlu1 %v1371_v9, %s1912_s13 }
 0x177   : > { %p1835_p7 = pneg %p1834_p11 }
 0x178   : > { %v2388_v12 = vpop.permute.xlu1 %1015  ;;  %v2390_v13 = vpop.permute.xlu0 %881 }
 0x17a   : > { %1393 = vrot.lane.b32.xlu0 %v1391_v14, %s1913_s26  ;;  %1229 = vrot.lane.b32.xlu1 %v1227_v15, %s1913_s26 }
 0x17c   : > { %v2396_v18 = vpop.permute.xlu1 %1323  ;;  %v2398_v19 = vpop.permute.xlu0 %737 }
 0x17e   : > { %1413 = vrot.lane.b32.xlu0 %v1411_v21, %s1914_s29  ;;  %931 = vrot.lane.b32.xlu1 %v929_v22, %s1914_s29  ;;  %v331_v22 = vld [vmem:[#allocation2] sm:$0x3] }
 0x180   : > { %v2404_v27 = vpop.permute.xlu1 %573  ;;  %v2406_v29 = vpop.permute.xlu0 %1199 }
 0x182   : > { %409 = vrot.lane.b32.xlu0 %v407_v30, %s1912_s13  ;;  %1249 = vrot.lane.b32.xlu1 %v1247_v31, %s1914_s29  ;;  %v336_v30 = vld [vmem:[#allocation2 + $0x3] sm:$0x3] }
 0x184   : > { %v2412_v36 = vpop.permute.xlu1 %1035  ;;  %v2414_v37 = vpop.permute.xlu0 %901 }
 0x186   : > { %430 = vrot.lane.b32.xlu0 %v428_v41, %s1913_s26  ;;  %1423 = vrot.lane.b32.xlu1 %v1421_v42, %s1914_s29 }
 0x188   : > { %v2420_v50 = vpop.permute.xlu1 %1343  ;;  %v2422_v51 = vpop.permute.xlu0 %757 }
 0x18a   : > { %451 = vrot.lane.b32.xlu0 %v449_v53, %s1914_s29  ;;  %420 = vrot.lane.b32.xlu1 %v418_v55, %s1912_s13  ;;  %s330_s13 = sld [smem:[#allocation4]] }
 0x18c   : > { %v2428_v60 = vpop.permute.xlu1 %593  ;;  %v2430_v61 = vpop.permute.xlu0 %1219 }
 0x18e   : > { %441 = vrot.lane.b32.xlu1 %v439_v62, %s1913_s26  ;;  %s1600_s26 = sld [smem:[#allocation4 + $0x31]] }
 0x190   : > { %v2434_v3 = vpop.permute.xlu1 %1055  ;;  %v2436_v4 = vpop.permute.xlu0 %921  ;;  %v332_v21 = vstv %s330_s13 }
 0x191   : > { %v333_v34 = vmul.f32 %v332_v21, %v331_v22  ;;  %v360_v21 = vsel %vm348_vm8, %v2332_v25, %v359_v35  ;;  %v380_v22 = vrot.slane %v2340_v32, 1 }
 0x192   : > { %462 = vrot.lane.b32.xlu1 %v460_v20, %s1914_s29  ;;  %s1915_s29 = smov 127  }
 0x194   : > { %v2440_v5 = vpop.permute.xlu1 %1363  ;;  %v2442_v8 = vpop.permute.xlu0 %1075  ;;  %v337_v31 = vstv %s1600_s26 }
 0x195   : > { %v338_v41 = vmul.f32 %v337_v31, %v336_v30 }
 0x197   : > { %v339_v59 = vadd.f32 %v338_v41, %v333_v34  ;;  %v516_v34 = vsel %vm348_vm8, %v2356_v48, %v515_v46 }
 0x198   : > { %v2444_v9 = vpop.permute.xlu1 %613  ;;  %v2446_v10 = vpop.permute.xlu0 %1383 }
 0x19c   : > { %v2448_v11 = vpop.permute.xlu1 %777  ;;  %v2450_v14 = vpop.permute.xlu0 %1095 }
 0x1a0   : > { %v2452_v15 = vpop.permute.xlu1 %1239  ;;  %v2454_v16 = vpop.permute.xlu0 %1403 }
 0x1a1   : > { %2774 = vst [vmem:[#allocation16_spill] sm:$0xff] %v2452_v15  ;;  %2775 = vst [vmem:[#allocation17_spill] sm:$0xff] %v2454_v16  ;;  %v381_v15 = vsel %vm370_vm9, %v2340_v32, %v380_v22 }
 0x1a4   : > { %v2456_v54 = vpop.permute.xlu1 %941  ;;  %v368_v17 = vpop.permute.xlu0 %367 }
 0x1a5   : > { %2776 = vst [vmem:[#allocation18_spill] sm:$0xff] %v2456_v54  ;;  %v369_v62 = vrot.slane %v368_v17, 1 }
 0x1a7   : > { %v371_v35 = vsel %vm370_vm9, %v368_v17, %v369_v62 }
 0x1a8   : > { %v2458_v23 = vpop.permute.xlu1 %1259  ;;  %v389_v24 = vpop.permute.xlu0 %388 }
 0x1a9   : > { %2777 = vst [vmem:[#allocation19_spill] sm:$0xff] %v2458_v23  ;;  %v535_v23 = vrot.slane %v2342_v33, 1 }
 0x1ac   : > { %v346_v42 = vpop.permute.xlu1 %345  ;;  %v504_v43 = vpop.permute.xlu0 %503 }
 0x1ad   : > { %v347_v53 = vrot.slane %v346_v42, 1  ;;  %v505_v55 = vrot.slane %v504_v43, 1 }
 0x1af   : > { %v349_v2 = vsel %vm348_vm8, %v346_v42, %v347_v53  ;;  %v506_v20 = vsel %vm348_vm8, %v504_v43, %v505_v55  ;;  %v679_v42 = vrot.slane %v2334_v26, 1  ;;  %v997_v43 = vrot.slane %v2350_v39, 1 }
 0x1b0   : > { %v351_v30 = vadd.f32 %v349_v2, %v339_v59  ;;  %v508_v31 = vadd.f32 %v506_v20, %v2220_v40  ;;  %v524_v1 = vpop.permute.xlu1 %523  ;;  %v668_v38 = vpop.permute.xlu0 %667  ;;  %v390_v55 = vrot.slane %v389_v24, 1  ;;  %v843_v2 = vrot.slane %v2364_v57, 1 }
 0x1b1   : > { %v525_v41 = vrot.slane %v524_v1, 1  ;;  %v669_v54 = vrot.slane %v668_v38, 1 }
 0x1b2   : > { %v362_v53 = vadd.f32 %v360_v21, %v351_v30  ;;  %v518_v25 = vadd.f32 %v516_v34, %v508_v31  ;;  %v536_v21 = vsel %vm370_vm9, %v2342_v33, %v535_v23  ;;  %v998_v31 = vsel %vm348_vm8, %v2350_v39, %v997_v43 }
 0x1b3   : > { %v526_v40 = vsel %vm370_vm9, %v524_v1, %v525_v41  ;;  %v670_v59 = vsel %vm348_vm8, %v668_v38, %v669_v54  ;;  %v680_v1 = vsel %vm348_vm8, %v2334_v26, %v679_v42  ;;  %v392_v34 = vsel %vm391_vm10, %v389_v24, %v390_v55 }
 0x1b4   : > { %v373_v20 = vadd.f32 %v371_v35, %v362_v53  ;;  %v528_v48 = vadd.f32 %v526_v40, %v518_v25  ;;  %v832_v46 = vpop.permute.xlu1 %831  ;;  %v986_v16 = vpop.permute.xlu0 %985  ;;  %v672_v38 = vadd.f32 %v670_v59, %v2227_v44  ;;  %v844_v33 = vsel %vm348_vm8, %v2364_v57, %v843_v2 }
 0x1b5   : > { %v833_v30 = vrot.slane %v832_v46, 1  ;;  %v987_v17 = vrot.slane %v986_v16, 1  ;;  %v555_v39 = vrot.slane %v2380_v6, 1 }
 0x1b6   : > { %v538_v54 = vadd.f32 %v536_v21, %v528_v48  ;;  %v383_v62 = vadd.f32 %v381_v15, %v373_v20  ;;  %v699_v15 = vrot.slane %v2372_v63, 1  ;;  %v682_v53 = vadd.f32 %v680_v1, %v672_v38 }
 0x1b7   : > { %v834_v41 = vsel %vm348_vm8, %v832_v46, %v833_v30  ;;  %v988_v32 = vsel %vm348_vm8, %v986_v16, %v987_v17  ;;  %v556_v48 = vsel %vm391_vm10, %v2380_v6, %v555_v39 }
 0x1b8   : > { %v836_v23 = vadd.f32 %v834_v41, %v2229_v45  ;;  %v990_v26 = vadd.f32 %v988_v32, %v2232_v47  ;;  %v688_v22 = vpop.permute.xlu1 %687  ;;  %v544_v44 = vpop.permute.xlu0 %543  ;;  %v2493_v42 = vadd.f32 %v392_v34, %v383_v62  ;;  %v1161_v45 = vrot.slane %v2358_v49, 1 }
 0x1b9   : > { %v689_v24 = vrot.slane %v688_v22, 1  ;;  %v545_v43 = vrot.slane %v544_v44, 1  ;;  %v863_v47 = vrot.slane %v2366_v58, 1  ;;  %v700_v20 = vsel %vm370_vm9, %v2372_v63, %v699_v15 }
 0x1ba   : > { %v846_v25 = vadd.f32 %v844_v33, %v836_v23  ;;  %v1000_v16 = vadd.f32 %v998_v31, %v990_v26  ;;  %v1162_v62 = vsel %vm348_vm8, %v2358_v49, %v1161_v45  ;;  %v1017_v32 = vrot.slane %v2388_v12, 1 }
 0x1bb   : > { %v690_v35 = vsel %vm370_vm9, %v688_v22, %v689_v24  ;;  %v546_v57 = vsel %vm391_vm10, %v544_v44, %v545_v43  ;;  %v864_v6 = vsel %vm370_vm9, %v2366_v58, %v863_v47 }
 0x1bc   : > { %v692_v55 = vadd.f32 %v690_v35, %v682_v53  ;;  %v548_v40 = vadd.f32 %v546_v57, %v538_v54  ;;  %v1150_v59 = vpop.permute.xlu1 %1149  ;;  %v852_v2 = vpop.permute.xlu0 %851  ;;  %v719_v54 = vrot.slane %v2374_v0, 1  ;;  %v1018_v58 = vsel %vm370_vm9, %v2388_v12, %v1017_v32 }
 0x1bd   : > { %v1151_v46 = vrot.slane %v1150_v59, 1  ;;  %v853_v21 = vrot.slane %v852_v2, 1 }
 0x1be   : > { %v702_v30 = vadd.f32 %v700_v20, %v692_v55  ;;  %v558_v17 = vadd.f32 %v556_v48, %v548_v40  ;;  %v720_v15 = vsel %vm391_vm10, %v2374_v0, %v719_v54  ;;  %v739_v54 = vrot.slane %v2398_v19, 1 }
 0x1bf   : > { %v1152_v1 = vsel %vm348_vm8, %v1150_v59, %v1151_v46  ;;  %v854_v38 = vsel %vm370_vm9, %v852_v2, %v853_v21  ;;  %v575_v46 = vrot.slane %v2404_v27, 1 }
 0x1c0   : > { %v1154_v31 = vadd.f32 %v1152_v1, %v2238_v52  ;;  %v856_v34 = vadd.f32 %v854_v38, %v846_v25  ;;  %v1006_v63 = vpop.permute.xlu1 %1005  ;;  %v708_v41 = vpop.permute.xlu0 %707  ;;  %v1181_v52 = vrot.slane %v2382_v7, 1  ;;  %v1325_v25 = vrot.slane %v2396_v18, 1 }
 0x1c1   : > { %v1007_v33 = vrot.slane %v1006_v63, 1  ;;  %v709_v23 = vrot.slane %v708_v41, 1 }
 0x1c2   : > { %v1164_v26 = vadd.f32 %v1162_v62, %v1154_v31  ;;  %v866_v22 = vadd.f32 %v864_v6, %v856_v34  ;;  %v1182_v0 = vsel %vm370_vm9, %v2382_v7, %v1181_v52  ;;  %v1326_v48 = vsel %vm348_vm8, %v2396_v18, %v1325_v25 }
 0x1c3   : > { %v1008_v44 = vsel %vm370_vm9, %v1006_v63, %v1007_v33  ;;  %v710_v49 = vsel %vm391_vm10, %v708_v41, %v709_v23  ;;  %v576_v41 = vsel %vm412_vm11, %v2404_v27, %v575_v46  ;;  %v1037_v6 = vrot.slane %v2412_v36, 1 }
 0x1c4   : > { %v1010_v39 = vadd.f32 %v1008_v44, %v1000_v16  ;;  %v712_v24 = vadd.f32 %v710_v49, %v702_v30  ;;  %v1314_v43 = vpop.permute.xlu1 %1313  ;;  %v1170_v53 = vpop.permute.xlu0 %1169  ;;  %v883_v16 = vrot.slane %v2390_v13, 1 }
 0x1c5   : > { %v1315_v35 = vrot.slane %v1314_v43, 1  ;;  %v1171_v57 = vrot.slane %v1170_v53, 1  ;;  %v1038_v27 = vsel %vm391_vm10, %v2412_v36, %v1037_v6 }
 0x1c6   : > { %v1020_v45 = vadd.f32 %v1018_v58, %v1010_v39  ;;  %v722_v47 = vadd.f32 %v720_v15, %v712_v24  ;;  %v1345_v24 = vrot.slane %v2420_v50, 1 }
 0x1c7   : > { %v1316_v55 = vsel %vm348_vm8, %v1314_v43, %v1315_v35  ;;  %v1172_v40 = vsel %vm370_vm9, %v1170_v53, %v1171_v57 }
 0x1c8   : > { %v1318_v59 = vadd.f32 %v1316_v55, %v2242_v56  ;;  %v1174_v2 = vadd.f32 %v1172_v40, %v1164_v26  ;;  %v564_v20 = vpop.permute.xlu1 %563  ;;  %v872_v12 = vpop.permute.xlu0 %871  ;;  %v884_v56 = vsel %vm391_vm10, %v2390_v13, %v883_v16  ;;  %v740_v13 = vsel %vm412_vm11, %v2398_v19, %v739_v54 }
 0x1c9   : > { %v565_v21 = vrot.slane %v564_v20, 1  ;;  %v873_v30 = vrot.slane %v872_v12, 1  ;;  %v1346_v36 = vsel %vm370_vm9, %v2420_v50, %v1345_v24  ;;  %v595_v16 = vrot.slane %v2428_v60, 1 }
 0x1ca   : > { %v1328_v1 = vadd.f32 %v1326_v48, %v1318_v59  ;;  %v1184_v38 = vadd.f32 %v1182_v0, %v1174_v2 }
 0x1cb   : > { %v566_v62 = vsel %vm412_vm11, %v564_v20, %v565_v21  ;;  %v874_v7 = vsel %vm391_vm10, %v872_v12, %v873_v30  ;;  %v759_v21 = vrot.slane %v2422_v51, 1 }
 0x1cc   : > { %v568_v31 = vadd.f32 %v566_v62, %v558_v17  ;;  %v876_v34 = vadd.f32 %v874_v7, %v866_v22  ;;  %v1026_v63 = vpop.permute.xlu1 %1025  ;;  %v728_v18 = vpop.permute.xlu0 %727  ;;  %v1201_v17 = vrot.slane %v2406_v29, 1  ;;  %v596_v62 = vsel %vm433_vm12, %v2428_v60, %v595_v16 }
 0x1cd   : > { %v1027_v32 = vrot.slane %v1026_v63, 1  ;;  %v729_v33 = vrot.slane %v728_v18, 1  ;;  %v1057_v7 = vrot.slane %v2434_v3, 1 }
 0x1ce   : > { %v578_v23 = vadd.f32 %v576_v41, %v568_v31  ;;  %v886_v26 = vadd.f32 %v884_v56, %v876_v34  ;;  %v1202_v19 = vsel %vm391_vm10, %v2406_v29, %v1201_v17  ;;  %v1221_v41 = vrot.slane %v2430_v61, 1 }
 0x1cf   : > { %v1028_v44 = vsel %vm391_vm10, %v1026_v63, %v1027_v32  ;;  %v730_v49 = vsel %vm412_vm11, %v728_v18, %v729_v33  ;;  %v1058_v60 = vsel %vm412_vm11, %v2434_v3, %v1057_v7 }
 0x1d0   : > { %v1030_v22 = vadd.f32 %v1028_v44, %v1020_v45  ;;  %v732_v15 = vadd.f32 %v730_v49, %v722_v47  ;;  %v1334_v52 = vpop.permute.xlu1 %1333  ;;  %v1190_v39 = vpop.permute.xlu0 %1189  ;;  %v903_v45 = vrot.slane %v2414_v37, 1 }
 0x1d1   : > { %v1335_v43 = vrot.slane %v1334_v52, 1  ;;  %v1191_v53 = vrot.slane %v1190_v39, 1 }
 0x1d2   : > { %v1040_v58 = vadd.f32 %v1038_v27, %v1030_v22  ;;  %v742_v25 = vadd.f32 %v740_v13, %v732_v15  ;;  %v904_v46 = vsel %vm412_vm11, %v2414_v37, %v903_v45  ;;  %v760_v37 = vsel %vm433_vm12, %v2422_v51, %v759_v21 }
 0x1d3   : > { %v1336_v35 = vsel %vm370_vm9, %v1334_v52, %v1335_v43  ;;  %v1192_v57 = vsel %vm391_vm10, %v1190_v39, %v1191_v53  ;;  %v1222_v51 = vsel %vm412_vm11, %v2430_v61, %v1221_v41  ;;  %v923_v52 = vrot.slane %v2436_v4, 1 }
 0x1d4   : > { %v1338_v47 = vadd.f32 %v1336_v35, %v1328_v1  ;;  %v1194_v55 = vadd.f32 %v1192_v57, %v1184_v38  ;;  %v584_v40 = vpop.permute.xlu1 %583  ;;  %v892_v0 = vpop.permute.xlu0 %891  ;;  %v615_v53 = vrot.slane %v2444_v9, 1  ;;  %v2583_v61 = vsub.s32 1, %v2104_v28 }
 0x1d5   : > { %v585_v59 = vrot.slane %v584_v40, 1  ;;  %v893_v2 = vrot.slane %v892_v0, 1  ;;  %v1097_v21 = vrot.slane %v2450_v14, 1 }
 0x1d6   : > { %v1348_v20 = vadd.f32 %v1346_v36, %v1338_v47  ;;  %v1204_v12 = vadd.f32 %v1202_v19, %v1194_v55  ;;  %v2580_v19 = vsub.s32 0, %v2104_v28  ;;  %v1077_v55 = vrot.slane %v2442_v8, 1 }
 0x1d7   : > { %v586_v48 = vsel %vm433_vm12, %v584_v40, %v585_v59  ;;  %v894_v29 = vsel %vm412_vm11, %v892_v0, %v893_v2  ;;  %v616_v59 = vsel %vm454_vm13, %v2444_v9, %v615_v53  ;;  %v779_v2 = vrot.slane %v2448_v11, 1 }
 0x1d8   : > { %v588_v30 = vadd.f32 %v586_v48, %v578_v23  ;;  %v896_v1 = vadd.f32 %v894_v29, %v886_v26  ;;  %v1046_v38 = vpop.permute.xlu1 %1045  ;;  %v748_v50 = vpop.permute.xlu0 %747  ;;  %v1365_v26 = vrot.slane %v2440_v5, 1  ;;  %v2594_v29 = vsub.s32 2, %v2104_v28 }
 0x1d9   : > { %v1047_v56 = vrot.slane %v1046_v38, 1  ;;  %v749_v54 = vrot.slane %v748_v50, 1  ;;  %v1078_v28 = vsel %vm433_vm12, %v2442_v8, %v1077_v55  ;;  %v1098_v41 = vsel %vm454_vm13, %v2450_v14, %v1097_v21 }
 0x1da   : > { %v598_v31 = vadd.f32 %v596_v62, %v588_v30  ;;  %v906_v34 = vadd.f32 %v904_v46, %v896_v1  ;;  %v1366_v3 = vsel %vm391_vm10, %v2440_v5, %v1365_v26  ;;  %v924_v5 = vsel %vm433_vm12, %v2436_v4, %v923_v52 }
 0x1db   : > { %v1048_v63 = vsel %vm412_vm11, %v1046_v38, %v1047_v56  ;;  %v750_v18 = vsel %vm433_vm12, %v748_v50, %v749_v54  ;;  %v1385_v4 = vrot.slane %v2446_v10, 1  ;;  %v780_v54 = vsel %vm454_vm13, %v2448_v11, %v779_v2 }
 0x1dc   : > { %v1050_v6 = vadd.f32 %v1048_v63, %v1040_v58  ;;  %v752_v32 = vadd.f32 %v750_v18, %v742_v25  ;;  %v1354_v33 = vpop.permute.xlu1 %1353  ;;  %v1210_v23 = vpop.permute.xlu0 %1209 }
 0x1dd   : > { %v1355_v44 = vrot.slane %v1354_v33, 1  ;;  %v1211_v49 = vrot.slane %v1210_v23, 1 }
 0x1de   : > { %v1060_v13 = vadd.f32 %v1058_v60, %v1050_v6  ;;  %v762_v17 = vadd.f32 %v760_v37, %v752_v32  ;;  %v1386_v37 = vsel %vm412_vm11, %v2446_v10, %v1385_v4 }
 0x1df   : > { %v1356_v22 = vsel %vm391_vm10, %v1354_v33, %v1355_v44  ;;  %v1212_v15 = vsel %vm412_vm11, %v1210_v23, %v1211_v49  ;;  %v2778_v44 = vld [vmem:[#allocation16_spill] sm:$0xff] }
 0x1e0   : > { %v1358_v39 = vadd.f32 %v1356_v22, %v1348_v20  ;;  %v1214_v27 = vadd.f32 %v1212_v15, %v1204_v12  ;;  %v604_v24 = vpop.permute.xlu1 %603  ;;  %v912_v43 = vpop.permute.xlu0 %911  ;;  %v1241_v49 = vrot.slane %v2778_v44, 1 }
 0x1e1   : > { %v605_v58 = vrot.slane %v604_v24, 1  ;;  %v913_v25 = vrot.slane %v912_v43, 1 }
 0x1e2   : > { %v1368_v35 = vadd.f32 %v1366_v3, %v1358_v39  ;;  %v1224_v57 = vadd.f32 %v1222_v51, %v1214_v27 }
 0x1e3   : > { %v606_v45 = vsel %vm454_vm13, %v604_v24, %v605_v58  ;;  %v914_v47 = vsel %vm433_vm12, %v912_v43, %v913_v25  ;;  %v1242_v58 = vsel %vm433_vm12, %v2778_v44, %v1241_v49 }
 0x1e4   : > { %v608_v40 = vadd.f32 %v606_v45, %v598_v31  ;;  %v916_v0 = vadd.f32 %v914_v47, %v906_v34  ;;  %v1066_v36 = vpop.permute.xlu1 %1065  ;;  %v768_v16 = vpop.permute.xlu0 %767 }
 0x1e5   : > { %v1067_v20 = vrot.slane %v1066_v36, 1  ;;  %v769_v12 = vrot.slane %v768_v16, 1 }
 0x1e6   : > { %v618_v48 = vadd.f32 %v616_v59, %v608_v40  ;;  %v926_v46 = vadd.f32 %v924_v5, %v916_v0  ;;  %v2781_v59 = vld [vmem:[#allocation19_spill] sm:$0xff] }
 0x1e7   : > { %v1068_v30 = vsel %vm433_vm12, %v1066_v36, %v1067_v20  ;;  %v770_v1 = vsel %vm454_vm13, %v768_v16, %v769_v12  ;;  %v1261_v2 = vrot.slane %v2781_v59, 1 }
 0x1e8   : > { %v1070_v38 = vadd.f32 %v1068_v30, %v1060_v13  ;;  %v772_v50 = vadd.f32 %v770_v1, %v762_v17  ;;  %v1374_v9 = vpop.permute.xlu1 %1373  ;;  %v1086_v62 = vpop.permute.xlu0 %1085  ;;  %v635_v7 = vrot.slane %v618_v48, %v2583_v61  ;;  %v631_v56 = vrot.slane %v618_v48, %v2580_v19  ;;  %v2779_v13 = vld [vmem:[#allocation17_spill] sm:$0xff] }
 0x1e9   : > { %v1375_v31 = vrot.slane %v1374_v9, 1  ;;  %v1087_v34 = vrot.slane %v1086_v62, 1  ;;  %v639_v60 = vrot.slane %v618_v48, %v2594_v29  ;;  %v1405_v17 = vrot.slane %v2779_v13, 1  ;;  %v2782_v48 = vld [vmem:[#allocation15_spill] sm:$0xff] }
 0x1ea   : > { %v782_v63 = vadd.f32 %v780_v54, %v772_v50  ;;  %v1080_v18 = vadd.f32 %v1078_v28, %v1070_v38  ;;  %642 = vrot.lane.b32.xlu1 %v635_v7, %s1915_s29  ;;  %640 = vrot.lane.b32.xlu0 %v631_v56, %s1915_s29  ;;  %v401_v4 = vrot.slane %v2782_v48, 1 }
 0x1eb   : > { %v1376_v6 = vsel %vm412_vm11, %v1374_v9, %v1375_v31  ;;  %v1088_v8 = vsel %vm454_vm13, %v1086_v62, %v1087_v34  ;;  %v1406_v25 = vsel %vm433_vm12, %v2779_v13, %v1405_v17  ;;  %v1262_v62 = vsel %vm454_vm13, %v2781_v59, %v1261_v2 }
 0x1ec   : > { %v1378_v32 = vadd.f32 %v1376_v6, %v1368_v35  ;;  %v1090_v33 = vadd.f32 %v1088_v8, %v1080_v18  ;;  %v1230_v11 = vpop.permute.xlu1 %1229  ;;  %v1394_v23 = vpop.permute.xlu0 %1393  ;;  %v795_v26 = vrot.slane %v782_v63, %v2580_v19  ;;  %v799_v3 = vrot.slane %v782_v63, %v2583_v61  ;;  %v2780_v35 = vld [vmem:[#allocation18_spill] sm:$0xff] }
 0x1ed   : > { %v1231_v10 = vrot.slane %v1230_v11, 1  ;;  %v1395_v22 = vrot.slane %v1394_v23, 1  ;;  %v803_v53 = vrot.slane %v782_v63, %v2594_v29  ;;  %v943_v45 = vrot.slane %v2780_v35, 1 }
 0x1ee   : > { %v2616_v15 = vadd.f32 %v1098_v41, %v1090_v33  ;;  %v1388_v14 = vadd.f32 %v1386_v37, %v1378_v32  ;;  %644 = vrot.lane.b32.xlu0 %v639_v60, %s1915_s29  ;;  %804 = vrot.lane.b32.xlu1 %v795_v26, %s1916_s5  ;;  %v402_v56 = vsel %vm391_vm10, %v2782_v48, %v401_v4 }
 0x1ef   : > { %v1232_v51 = vsel %vm433_vm12, %v1230_v11, %v1231_v10  ;;  %v1396_v52 = vsel %vm433_vm12, %v1394_v23, %v1395_v22  ;;  %v944_v16 = vsel %vm454_vm13, %v2780_v35, %v943_v45  ;;  %v404_v31 = vadd.f32 %v402_v56, %v2493_v42 }
 0x1f0   : > { %v1234_v39 = vadd.f32 %v1232_v51, %v1224_v57  ;;  %v1398_v27 = vadd.f32 %v1396_v52, %v1388_v14  ;;  %v932_v24 = vpop.permute.xlu1 %931  ;;  %v1414_v43 = vpop.permute.xlu0 %1413  ;;  %v1113_v18 = vrot.slane %v2616_v15, %v2580_v19  ;;  %v1117_v60 = vrot.slane %v2616_v15, %v2583_v61 }
 0x1f1   : > { %v933_v47 = vrot.slane %v932_v24, 1  ;;  %v1415_v28 = vrot.slane %v1414_v43, 1  ;;  %v1121_v26 = vrot.slane %v2616_v15, %v2594_v29 }
 0x1f2   : > { %v1408_v5 = vadd.f32 %v1406_v25, %v1398_v27  ;;  %806 = vrot.lane.b32.xlu0 %v799_v3, %s1916_s5  ;;  %808 = vrot.lane.b32.xlu1 %v803_v53, %s1916_s5  ;;  %v1244_v57 = vadd.f32 %v1242_v58, %v1234_v39 }
 0x1f3   : > { %v934_v55 = vsel %vm454_vm13, %v932_v24, %v933_v47  ;;  %v1416_v33 = vsel %vm454_vm13, %v1414_v43, %v1415_v28 }
 0x1f4   : > { %v936_v40 = vadd.f32 %v934_v55, %v926_v46  ;;  %v1250_v0 = vpop.permute.xlu1 %1249  ;;  %v410_v36 = vpop.permute.xlu0 %409  ;;  %v1418_v10 = vadd.f32 %v1416_v33, %v1408_v5 }
 0x1f5   : > { %v1251_v20 = vrot.slane %v1250_v0, 1  ;;  %v411_v30 = vrot.slane %v410_v36, 1 }
 0x1f6   : > { %v946_v12 = vadd.f32 %v944_v16, %v936_v40  ;;  %v2783_v40 = vlaneseq }
 0x1f7   : > { %v1252_v21 = vsel %vm454_vm13, %v1250_v0, %v1251_v20  ;;  %v413_v54 = vsel %vm412_vm11, %v410_v36, %v411_v30 }
 0x1f8   : > { %v1254_v1 = vadd.f32 %v1252_v21, %v1244_v57  ;;  %v1424_v38 = vpop.permute.xlu1 %1423  ;;  %v431_v50 = vpop.permute.xlu0 %430  ;;  %v951_v9 = vrot.slane %v946_v12, %v2580_v19  ;;  %v955_v46 = vrot.slane %v946_v12, %v2583_v61  ;;  %v959_v63 = vrot.slane %v946_v12, %v2594_v29 }
 0x1f9   : > { %v1425_v37 = vrot.slane %v1424_v38, 1  ;;  %v432_v41 = vrot.slane %v431_v50, 1  ;;  %v415_v8 = vadd.f32 %v413_v54, %v404_v31  ;;  %v301_v0 = vand.u32 127, %v2783_v40 }
 0x1fa   : > { %v1264_v7 = vadd.f32 %v1262_v62, %v1254_v1  ;;  %960 = vrot.lane.b32.xlu0 %v951_v9, %s1917_s16  ;;  %962 = vrot.lane.b32.xlu1 %v955_v46, %s1917_s16 }
 0x1fb   : > { %v1426_v44 = vsel %vm454_vm13, %v1424_v38, %v1425_v37  ;;  %v434_v49 = vsel %vm433_vm12, %v431_v50, %v432_v41  ;;  %v302_v59 = vadd.s32 128, %v301_v0  ;;  %v307_v12 = vand.u32 15, %v301_v0 }
 0x1fc   : > { %v421_v34 = vpop.permute.xlu1 %420  ;;  %v452_v32 = vpop.permute.xlu0 %451  ;;  %v1428_v51 = vadd.f32 %v1426_v44, %v1418_v10  ;;  %v1277_v27 = vrot.slane %v1264_v7, %v2580_v19  ;;  %v1281_v24 = vrot.slane %v1264_v7, %v2583_v61  ;;  %v1285_v35 = vrot.slane %v1264_v7, %v2594_v29 }
 0x1fd   : > { %v422_v6 = vrot.slane %v421_v34, 1  ;;  %v453_v13 = vrot.slane %v452_v32, 1  ;;  %v314_v48 = vand.u32 15, %v302_v59  ;;  %v468_v21 = vadd.s32 4294967293, %v307_v12 }
 0x1fe   : > { %964 = vrot.lane.b32.xlu0 %v959_v63, %s1917_s16  ;;  %1122 = vrot.lane.b32.xlu1 %v1113_v18, %s1918_s30  ;;  %v1441_v58 = vrot.slane %v1428_v51, %v2580_v19  ;;  %v1445_v47 = vrot.slane %v1428_v51, %v2583_v61  ;;  %v1449_v5 = vrot.slane %v1428_v51, %v2594_v29  ;;  %v619_v30 = vadd.s32 4294967294, %v307_v12 }
 0x1ff   : > { %v423_v11 = vsel %vm412_vm11, %v421_v34, %v422_v6  ;;  %v455_v15 = vsel %vm454_vm13, %v452_v32, %v453_v13  ;;  %v469_v29 = vadd.s32 4294967293, %v314_v48  ;;  %v620_v1 = vadd.s32 4294967294, %v314_v48 }
 0x200   : > { %v425_v23 = vadd.f32 %v423_v11, %v415_v8  ;;  %v442_v42 = vpop.permute.xlu1 %441  ;;  %v783_v50 = vadd.s32 4294967295, %v307_v12  ;;  %vm470_vm15 = vcmp.ge.s32.totalorder %v468_v21, 0  ;;  %v784_v62 = vadd.s32 4294967295, %v314_v48 }
 0x201   : > { %v443_v17 = vrot.slane %v442_v42, 1  ;;  %vm471_vm0 = vcmp.ge.s32.totalorder %v469_v29, 0  ;;  %v328_v7 = vstv %s2663_s19  ;;  %vm621_vm1 = vcmp.ge.s32.totalorder %v619_v30, 0 }
 0x202   : > { %v436_v22 = vadd.f32 %v434_v49, %v425_v23  ;;  %1124 = vrot.lane.b32.xlu0 %v1117_v60, %s1918_s30  ;;  %1126 = vrot.lane.b32.xlu1 %v1121_v26, %s1918_s30  ;;  %vm622_vm2 = vcmp.ge.s32.totalorder %v620_v1, 0  ;;  %v1101_v54 = vadd.s32 1, %v307_v12  ;;  %v1102_v31 = vadd.s32 1, %v314_v48 }
 0x203   : > { %v444_v14 = vsel %vm433_vm12, %v442_v42, %v443_v17  ;;  %vm785_vm4 = vcmp.ge.s32.totalorder %v783_v50, 0  ;;  %v1265_v41 = vadd.s32 2, %v307_v12  ;;  %vm786_vm5 = vcmp.ge.s32.totalorder %v784_v62, 0 }
 0x204   : > { %v446_v52 = vadd.f32 %v444_v14, %v436_v22  ;;  %v463_v39 = vpop.permute.xlu1 %462  ;;  %v1266_v11 = vadd.s32 2, %v314_v48  ;;  %vm1105_vm8 = vcmp.lt.s32.totalorder %v1101_v54, 16  ;;  %vm1106_vm9 = vcmp.lt.s32.totalorder %v1102_v31, 16 }
 0x205   : > { %v464_v43 = vrot.slane %v463_v39, 1  ;;  %vm1269_vm10 = vcmp.lt.s32.totalorder %v1265_v41, 16  ;;  %vm1292_vm11 = vcmask 1006592  }
 0x206   : > { %v457_v3 = vadd.f32 %v455_v15, %v446_v52  ;;  %1286 = vrot.lane.b32.xlu0 %v1277_v27, %s1919_s11  ;;  %1288 = vrot.lane.b32.xlu1 %v1281_v24, %s1919_s11  ;;  %vm1270_vm12 = vcmp.lt.s32.totalorder %v1266_v11, 16  ;;  %v1429_v52 = vadd.s32 3, %v307_v12  ;;  %v1430_v15 = vadd.s32 3, %v314_v48 }
 0x207   : > { %v465_v53 = vsel %vm454_vm13, %v463_v39, %v464_v43  ;;  %vm1456_vm13 = vcmask 998400  }
 0x208   : > { %v467_v25 = vadd.f32 %v465_v53, %v457_v3 }
 0x20a   : > { %v484_v45 = vrot.slane %v467_v25, %v2583_v61  ;;  %1290 = vrot.lane.b32.xlu0 %v1285_v35, %s1919_s11  ;;  %1450 = vrot.lane.b32.xlu1 %v1441_v58, %s1920_s8  ;;  %v480_v38 = vrot.slane %v467_v25, %v2580_v19 }
 0x20c   : > { %v487_v34 = vsel %vm470_vm15, %v480_v38, 0.0  ;;  %v488_v63 = vsel %vm471_vm0, %v484_v45, 0.0  ;;  %vm1434_vm15 = vcmp.lt.s32.totalorder %v1430_v15, 16 }
 0x20d   : > { %v489_v23 = vadd.f32 %v487_v34, %v328_v7  ;;  %v490_v42 = vadd.f32 %v488_v63, %v328_v7  ;;  %v1477_v7 = vld [vmem:[%s2087_s12] sm:$0xff]  ;;  %s1836_s12 = sshll.u32 %s1921_s1, 4  ;;  %s1837_s12 = int_to_ptr.vmem [resolvable:$false] %s1836_s12 }
 0x20e   : > { %1452 = vrot.lane.b32.xlu0 %v1445_v47, %s1920_s8  ;;  %1454 = vrot.lane.b32.xlu1 %v1449_v5, %s1920_s8  ;;  %s1838_s2 = scalar_lea.vmem %s1837_s12, 256  ;;  %p1839_p0 = scmp.lt.s32.totalorder %s2688_s21, %s1837_s12 }
 0x20f   : > { %p1840_p3 = scmp.lt.s32.totalorder %s1838_s2, %s1832_s4 }
 0x211   : > { %p1841_p12 = por %p1840_p3, %p1839_p0 }
 0x213   : > { %p1842_p5 = pnand %p1841_p12, %p1835_p7 }
 0x25c   : > { %v643_v57 = vpop.permute.xlu1 %642  ;;  %v641_v55 = vpop.permute.xlu0 %640 }
 0x25d   : > { %v647_v56 = vsel %vm646_vm14, %v641_v55, %v643_v57 }
 0x25e   : > { %v651_v32 = vsel %vm621_vm1, %v647_v56, 0.0 }
 0x25f   : > { %v653_v13 = vadd.f32 %v651_v32, %v489_v23 }
 0x260   : > { %v805_v36 = vpop.permute.xlu1 %804  ;;  %v645_v16 = vpop.permute.xlu0 %644 }
 0x261   : > { %v648_v28 = vsel %vm646_vm14, %v643_v57, %v645_v16  ;;  %vm1433_vm14 = vcmp.lt.s32.totalorder %v1429_v52, 16 }
 0x262   : > { %v652_v33 = vsel %vm622_vm2, %v648_v28, 0.0 }
 0x263   : > { %v654_v17 = vadd.f32 %v652_v33, %v490_v42 }
 0x264   : > { %v809_v2 = vpop.permute.xlu1 %808  ;;  %v807_v20 = vpop.permute.xlu0 %806 }
 0x265   : > { %v811_v6 = vsel %vm810_vm3, %v805_v36, %v807_v20  ;;  %v812_v8 = vsel %vm810_vm3, %v807_v20, %v809_v2 }
 0x266   : > { %v815_v60 = vsel %vm785_vm4, %v811_v6, 0.0  ;;  %v816_v26 = vsel %vm786_vm5, %v812_v8, 0.0 }
 0x267   : > { %v817_v39 = vadd.f32 %v815_v60, %v653_v13  ;;  %v818_v27 = vadd.f32 %v816_v26, %v654_v17 }
 0x26c   : > { %v963_v4 = vpop.permute.xlu1 %962  ;;  %v961_v61 = vpop.permute.xlu0 %960 }
 0x26d   : > { %v967_v14 = vsel %vm966_vm6, %v961_v61, %v963_v4 }
 0x26e   : > { %v971_v25 = vadd.f32 %v967_v14, %v817_v39 }
 0x270   : > { %v1123_v9 = vpop.permute.xlu1 %1122  ;;  %v965_v46 = vpop.permute.xlu0 %964 }
 0x271   : > { %v968_v51 = vsel %vm966_vm6, %v963_v4, %v965_v46 }
 0x272   : > { %v972_v35 = vadd.f32 %v968_v51, %v818_v27 }
 0x274   : > { %v1127_v18 = vpop.permute.xlu1 %1126  ;;  %v1125_v37 = vpop.permute.xlu0 %1124 }
 0x275   : > { %v1129_v10 = vsel %vm1128_vm7, %v1123_v9, %v1125_v37  ;;  %v1130_v22 = vsel %vm1128_vm7, %v1125_v37, %v1127_v18 }
 0x276   : > { %v1133_v43 = vsel %vm1105_vm8, %v1129_v10, 0.0  ;;  %v1134_v3 = vsel %vm1106_vm9, %v1130_v22, 0.0 }
 0x277   : > { %v1135_v57 = vadd.f32 %v1133_v43, %v971_v25  ;;  %v1136_v55 = vadd.f32 %v1134_v3, %v972_v35 }
 0x278   : > { %v1289_v44 = vpop.permute.xlu1 %1288  ;;  %v1287_v49 = vpop.permute.xlu0 %1286 }
 0x279   : > { %v1293_v24 = vsel %vm1292_vm11, %v1287_v49, %v1289_v44 }
 0x27a   : > { %v1297_v47 = vsel %vm1269_vm10, %v1293_v24, 0.0 }
 0x27b   : > { %v1299_v36 = vadd.f32 %v1297_v47, %v1135_v57 }
 0x27c   : > { %v1451_v53 = vpop.permute.xlu1 %1450  ;;  %v1291_v58 = vpop.permute.xlu0 %1290 }
 0x27d   : > { %v1294_v45 = vsel %vm1292_vm11, %v1289_v44, %v1291_v58 }
 0x27e   : > { %v1298_v5 = vsel %vm1270_vm12, %v1294_v45, 0.0 }
 0x27f   : > { %v1300_v16 = vadd.f32 %v1298_v5, %v1136_v55 }
 0x280   : > { %v1455_v40 = vpop.permute.xlu1 %1454  ;;  %v1453_v0 = vpop.permute.xlu0 %1452 }
 0x281   : > { %v1457_v59 = vsel %vm1456_vm13, %v1451_v53, %v1453_v0  ;;  %v1458_v2 = vsel %vm1456_vm13, %v1453_v0, %v1455_v40 }
 0x282   : > { %v1461_v20 = vsel %vm1433_vm14, %v1457_v59, 0.0  ;;  %v1462_v12 = vsel %vm1434_vm15, %v1458_v2, 0.0 }
 0x283   : > { %v1463_v48 = vadd.f32 %v1461_v20, %v1299_v36  ;;  %v1464_v4 = vadd.f32 %v1462_v12, %v1300_v16 }
 0x285   : > { %v1697_v61 = vmul.f32 -1.442695, %v1463_v48  ;;  %v1698_v21 = vmul.f32 -1.442695, %v1464_v4 }
 0x287   : > { %1779 = vpow2.f32 %v1697_v61 }
 0x288   : > { %1781 = vpow2.f32 %v1698_v21 }
 0x291   : > { %v1780_v29 = vpop.eup %1779 }
 0x292   : > { %v1782_v30 = vpop.eup %1781  ;;  %v1471_v1 = vadd.f32 1.0, %v1780_v29 }
 0x293   : > { %v1472_v38 = vadd.f32 1.0, %v1782_v30 }
 0x294   : > { %1783 = vrcp.f32 %v1471_v1 }
 0x295   : > { %1785 = vrcp.f32 %v1472_v38 }
 0x29e   : > { %v1784_v50 = vpop.eup %1783 }
 0x29f   : > { %v1786_v9 = vpop.eup %1785  ;;  %v1481_v46 = vrot.slane %v1784_v50, %v2580_v19 }
 0x2a0   : > { %v1485_v62 = vrot.slane %v1786_v9, %v2580_v19 }
 0x2a2   : > { %v1488_v56 = vcombine.low %v1481_v46, %v1485_v62 }
 0x2a4   : > { %v1490_v28 = vmul.f32 %v1488_v56, %v1477_v7 }
 0x2a6   : > { %1491 = vst [vmem:[%s201_s9] sm:$0xff] %v1490_v28 }
 0x2a7   : > { %1845 = shalt.err (!%p1842_p5)
}
 0x2a8   : > { %s1846_s10 = scalar_lea.hbm %s2686_s27, 128  ;;  %s1850_s13 = scalar_lea.hbm %s2733_s3, 256 }
 0x2a9   : > { %p1847_p10 = scmp.ne.s32.totalorder %s2686_s27, %s1846_s10  ;;  %p1851_p6 = scmp.lt.u32.totalorder %s2686_s27, %s2733_s3 }
 0x2aa   : > { %p1852_p13 = scmp.lt.u32.totalorder %s1850_s13, %s1846_s10  ;;  %p1854_p8 = scmp.lt.u32.totalorder %s1846_s10, %s2686_s27 }
 0x2ab   : > { %p1848_p2 = pnand %p1847_p10, %p2785_p9 }
 0x2ac   : > { %p1853_p4 = por %p1852_p13, %p1851_p6 }
 0x2ad   : > { %p1849_p1 = pneg %p1848_p2 }
 0x2ae   : > { %p1855_p11 = por %p1854_p8, %p1853_p4 }
 0x2b0   : > { %p1856_p7 = pnand %p1855_p11, %p1849_p1 }
 0x2b2   : > { %1859 = shalt.err (!%p1856_p7)
}
 0x2b3   : > { %1712 = dma.vmem_to_hbm [thread:$0]  (%p2785_p9), %s2688_s21, 128, %s2686_s27, %s1493_s28  }
 0x2b4 PF: > { %s1519_s5 = sand.u32 1, %s1890_s14   ;;  %p2786_p0 = scmp.ne.s32.totalorder %s2755_s20, 0 }
 0x2b5   : > { %p2787_p3 = scmp.ge.s32.totalorder %s1902_s17, 2  ;;  %s1520_s16 = scalar_lea.sflag [#allocation6], %s1519_s5 }
 0x2b7   : > { %p1723_p12 = pnand %p2787_p3, %p2786_p0 }
 0x2b9   : > { %1885 = dma.done.wait (!%p1723_p12), %s1520_s16, 128  }
 0x2ba   : > { %1887 = vsyncadd (!%p1723_p12), %s1520_s16, 4294967168  ;;  %s2788_s30 = sld [smem:[#allocation13_spill]]  ;;  %s2789_s16 = sld [smem:[#allocation14_spill]] }
 0x2bb   : > { %p18_p5 = scmp.ge.s32.totalorder %s1996_s25, 4   ;;  %s2790_s14 = smov %s1894_s15 }
 0x2bc   : > { %s2792_s17 = smov %s1996_s25 }
 0x2bd   :  { %20 = sbr.rel (!%p18_p5) target bundleno = 10 (0xa), region = 83 }
 0x2c0   : > { %s2791_s15 = smov %s2788_s30 }
 0x2c4   :  { %1525 = vsyncpa [#allocation5], 1 }
 0x2c5   :  { %1527 = vsyncpa [#allocation5 + $0x1], 1 }
 0x2c6   :  { %1528 = vsyncpa [#allocation6], 1 }
 0x2c7   :  { %1530 = vsyncpa [#allocation6 + $0x1], 1 }
 0x2c8   :  { %1531 = vsyncpa [#allocation7], 1 }
 0x2c9   :  { %1533 = vsyncpa [#allocation7 + $0x1], 1 }

</bundles_post_ra>
